<compile_context>
chip_gen: v7x
topology: tpu7x:2x2x1
jax: 0.10.0
libtpu: 0.0.40
codegen_flags: <defaults>
</compile_context>

<pallas_src>
import functools

import jax
import jax.numpy as jnp
from jax.experimental import pallas as pl
from jax.experimental.pallas import tpu as pltpu

F32 = jnp.float32

G = 128          # per-gate lane stride: gates z|r|n live at column offsets 0/128/256
CLS_PAD = 128    # lane-dense classifier output width (sliced to n_classes in wrapper)


def _rup8(n):
    return ((n + 7) // 8) * 8


def _wbig_rows(F_s, s_hid, s_out, H):
    """Sublane-aligned row offsets of each weight inside the fused 2-D weight blob."""
    r_s0 = 0
    r_s1 = r_s0 + _rup8(F_s)      # W_s0 rows
    r_h = r_s1 + _rup8(s_hid)     # W_s1 rows
    r_cs = r_h + _rup8(H)         # W_h rows
    r_ch = r_cs + _rup8(s_out)    # W_cls_s rows
    rows = r_ch + _rup8(H)        # W_cls_h rows
    return r_s0, r_s1, r_h, r_cs, r_ch, rows


# ---------------------------------------------------------------------------
# Single fused forward kernel (one grid step = one batch tile of Bt rows)
# ---------------------------------------------------------------------------
def fused_forward_kernel(x_ref, series_ref, mean_ref, wft_ref, wbig_ref, b_ref,
                         out_ref, *, T, F_t, H, Bt, s_hid, s_out,
                         r_s0, r_s1, r_h, r_cs, r_ch):
    rows = T * Bt

    # ---- unpack weight blobs (all slices sublane / lane-group aligned) ------
    w_s0 = wbig_ref[r_s0:r_s1, 0:s_hid]                  # (Fs_pad, s_hid)
    w_s1 = wbig_ref[r_s1:r_s1 + s_hid, 0:s_out]          # (s_hid, s_out)
    w_h = wbig_ref[r_h:r_h + H, :]                       # (H, 3G) gates @ 0/G/2G
    w_cls_s = wbig_ref[r_cs:r_cs + s_out, 0:CLS_PAD]     # (s_out, CLS_PAD)
    w_cls_h = wbig_ref[r_ch:r_ch + H, 0:CLS_PAD]         # (H, CLS_PAD)

    w_att = wft_ref[0][:, 0:F_t]                         # (F_t, F_t)
    w_gx = wft_ref[1][:, 0:F_t]                          # (F_t, F_t)
    w_gh = wft_ref[2][:, 0:H]                            # (F_t, H)
    w_x = wft_ref[3]                                     # (F_t, 3G)
    w_m = wft_ref[4]                                     # (F_t, 3G)

    b_s0 = b_ref[0:1, 0:s_hid]
    b_s1 = b_ref[1:2, 0:s_out]
    b_att = b_ref[2:3, 0:F_t]
    b_gx = b_ref[3:4, 0:F_t]
    b_gh = b_ref[4:5, 0:H]
    b_xm = b_ref[5:6, :]                                 # (1, 3G)
    b_cls = b_ref[6:7, 0:CLS_PAD]

    # ---- static encoder: Linear-ReLU-Linear-ReLU ----------------------------
    s = jnp.maximum(
        jnp.dot(x_ref[...], w_s0, preferred_element_type=F32) + b_s0, 0.0)
    s = jnp.maximum(jnp.dot(s, w_s1, preferred_element_type=F32) + b_s1, 0.0)

    # ---- time-major series rows: (T, Bt, F_t) -> (T*Bt, F_t) ----------------
    # Bt is a multiple of 8, so this merge is sublane-tile aligned (no relayout).
    v = series_ref[0].reshape(rows, F_t)
    m = series_ref[1].reshape(rows, F_t)
    d = series_ref[2].reshape(rows, F_t)
    xl = series_ref[3].reshape(rows, F_t)

    # ---- PreSpatialAttn: feature-wise softmax gating -------------------------
    e = jnp.dot(v, w_att, preferred_element_type=F32) + b_att
    e = e - jnp.max(e, axis=-1, keepdims=True)
    p = jnp.exp(e)
    alpha = p / jnp.sum(p, axis=-1, keepdims=True)       # exact (review concern)
    xa = alpha * v

    # ---- GRU-D decays (two aligned matmuls, no post-matmul lane split) -------
    gx = jnp.exp(-jnp.maximum(
        jnp.dot(d, w_gx, preferred_element_type=F32) + b_gx, 0.0))   # (rows, F_t)
    gh = jnp.exp(-jnp.maximum(
        jnp.dot(d, w_gh, preferred_element_type=F32) + b_gh, 0.0))   # (rows, H)

    # ---- missing-value imputation --------------------------------------------
    mean = mean_ref[...]                                  # (1, F_t)
    x_hat = m * xa + (1.0 - m) * (gx * xl + (1.0 - gx) * mean)

    # ---- gate pre-activations for ALL timesteps (no concat, two matmuls) -----
    pre = (jnp.dot(x_hat, w_x, preferred_element_type=F32)
           + jnp.dot(m, w_m, preferred_element_type=F32) + b_xm)     # (rows, 3G)

    # ---- recurrence: one (Bt,H)x(H,3G) matmul per step -----------------------
    # T small & static -> unrolled; all slices sublane / lane-group aligned.
    h = jnp.zeros((Bt, H), dtype=F32)
    for t in range(T):
        r0 = t * Bt                                       # multiple of 8
        pre_t = pre[r0:r0 + Bt]                           # (Bt, 3G)
        hd = gh[r0:r0 + Bt] * h                           # decayed hidden state
        hp = jnp.dot(hd, w_h, preferred_element_type=F32) # (Bt, 3G)
        z = jax.nn.sigmoid(pre_t[:, 0:H] + hp[:, 0:H])
        r = jax.nn.sigmoid(pre_t[:, G:G + H] + hp[:, G:G + H])
        n = jnp.tanh(pre_t[:, 2 * G:2 * G + H] + r * hp[:, 2 * G:2 * G + H])
        h = (1.0 - z) * hd + z * n

    # ---- classifier (split weights, no embedding concat; lane-dense store) ---
    out_ref[...] = (jnp.dot(s, w_cls_s, preferred_element_type=F32)
                    + jnp.dot(h, w_cls_h, preferred_element_type=F32) + b_cls)


# ---------------------------------------------------------------------------
# Parameter init (natural layout) + packing into the fused kernel blobs
# ---------------------------------------------------------------------------
def _pad_gate_cols(w, H):
    """(rows, 3H) natural z|r|n -> (rows, 3G): gate g at cols [g*G, g*G+H)."""
    out = jnp.zeros((w.shape[0], 3 * G), F32)
    for g in range(3):
        out = out.at[:, g * G:g * G + H].set(w[:, g * H:(g + 1) * H])
    return out


def pack_params(nat, meta):
    F_s, F_t, H = meta["F_s"], meta["F_t"], meta["H"]
    s_hid, s_out, n_cls = meta["s_hid"], meta["s_out"], meta["n_classes"]
    r_s0, r_s1, r_h, r_cs, r_ch, rows = _wbig_rows(F_s, s_hid, s_out, H)

    wbig = jnp.zeros((rows, 3 * G), F32)
    wbig = wbig.at[r_s0:r_s0 + F_s, 0:s_hid].set(nat["W_s0"])
    wbig = wbig.at[r_s1:r_s1 + s_hid, 0:s_out].set(nat["W_s1"])
    wbig = wbig.at[r_h:r_h + H, :].set(_pad_gate_cols(nat["W_h"], H))
    wbig = wbig.at[r_cs:r_cs + s_out, 0:n_cls].set(nat["W_cls_s"])
    wbig = wbig.at[r_ch:r_ch + H, 0:n_cls].set(nat["W_cls_h"])

    wft = jnp.zeros((5, F_t, 3 * G), F32)
    wft = wft.at[0, :, 0:F_t].set(nat["W_att"])
    wft = wft.at[1, :, 0:F_t].set(nat["W_gx"])
    wft = wft.at[2, :, 0:H].set(nat["W_gh"])
    wft = wft.at[3].set(_pad_gate_cols(nat["W_x"], H))
    wft = wft.at[4].set(_pad_gate_cols(nat["W_m"], H))

    bias = jnp.zeros((8, 3 * G), F32)
    bias = bias.at[0, 0:s_hid].set(nat["b_s0"])
    bias = bias.at[1, 0:s_out].set(nat["b_s1"])
    bias = bias.at[2, 0:F_t].set(nat["b_att"])
    bias = bias.at[3, 0:F_t].set(nat["b_gx"])
    bias = bias.at[4, 0:H].set(nat["b_gh"])
    bias = bias.at[5, :].set(_pad_gate_cols(nat["b_xm"][None, :], H)[0])
    bias = bias.at[6, 0:n_cls].set(nat["b_cls"])

    return {"wbig": wbig, "wft": wft, "bias": bias}


def init_params(seed, F_s, F_t, H, n_classes, static_hidden=32, static_out=32):
    keys = iter(jax.random.split(jax.random.PRNGKey(seed), 32))

    def nxt(shape, scale=0.1):
        return (scale * jax.random.normal(next(keys), shape)).astype(F32)

    nat = {
        "W_s0": nxt((F_s, static_hidden)), "b_s0": nxt((static_hidden,)),
        "W_s1": nxt((static_hidden, static_out)), "b_s1": nxt((static_out,)),
        "W_att": nxt((F_t, F_t)), "b_att": nxt((F_t,)),
        "W_gx": nxt((F_t, F_t)), "b_gx": nxt((F_t,)),
        "W_gh": nxt((F_t, H)), "b_gh": nxt((H,)),
        "W_x": nxt((F_t, 3 * H)), "W_m": nxt((F_t, 3 * H)), "b_xm": nxt((3 * H,)),
        "W_h": nxt((H, 3 * H)),
        "W_cls_s": nxt((static_out, n_classes)),
        "W_cls_h": nxt((H, n_classes)),
        "b_cls": nxt((n_classes,)),
    }
    meta = dict(F_s=F_s, F_t=F_t, H=H, n_classes=n_classes,
                s_hid=static_hidden, s_out=static_out)
    return {"nat": nat, "pack": pack_params(nat, meta), "meta": meta}


# ---------------------------------------------------------------------------
# Forward wrapper: one pallas_call, batch-tiled grid, weights VMEM-resident
# ---------------------------------------------------------------------------
def forward(params, inputs, block_b=None):
    meta, pk = params["meta"], params["pack"]
    F_s, F_t, H = meta["F_s"], meta["F_t"], meta["H"]
    s_hid, s_out, n_cls = meta["s_hid"], meta["s_out"], meta["n_classes"]

    x = inputs["X"].astype(F32)                           # (B, F_s)
    values = inputs["X_t"].astype(F32)                    # (B, T, F_t)
    masks = inputs["X_t_mask"].astype(F32)
    deltas = inputs["deltaT_t"].astype(F32)
    locf = inputs["X_t_filledLOCF"].astype(F32)
    mean2d = inputs["empirical_mean"].reshape(1, -1).astype(F32)

    B, T, _ = values.shape
    # batch tile: multiple of 8 sublanes; keep <=256 so blocks fit v7x's 64 MiB VMEM.
    if block_b is None:
        block_b = min(256, _rup8(B))
    Bt = _rup8(block_b)
    Bp = pl.cdiv(B, Bt) * Bt
    Fs_pad = _rup8(F_s)

    # ---- wrapper-side layout plumbing (cheap XLA ops, once per call) ---------
    x_pad = jnp.zeros((Bp, Fs_pad), F32).at[:B, :F_s].set(x)
    # pack the four series into one time-major tensor: (4, T, Bp, F_t)
    series = jnp.stack([values, masks, deltas, locf], axis=0)        # (4,B,T,F)
    series = jnp.transpose(series, (0, 2, 1, 3))                     # (4,T,B,F)
    series = jnp.pad(series, ((0, 0), (0, 0), (0, Bp - B), (0, 0)))

    r_s0, r_s1, r_h, r_cs, r_ch, wrows = _wbig_rows(F_s, s_hid, s_out, H)

    kernel = functools.partial(
        fused_forward_kernel, T=T, F_t=F_t, H=H, Bt=Bt,
        s_hid=s_hid, s_out=s_out,
        r_s0=r_s0, r_s1=r_s1, r_h=r_h, r_cs=r_cs, r_ch=r_ch)

    logits_padded = pl.pallas_call(
        kernel,
        out_shape=jax.ShapeDtypeStruct((Bp, CLS_PAD), F32),
        grid=(Bp // Bt,),
        in_specs=[
            pl.BlockSpec((Bt, Fs_pad), lambda i: (i, 0)),             # static feats
            pl.BlockSpec((4, T, Bt, F_t), lambda i: (0, 0, i, 0)),    # packed series
            pl.BlockSpec((1, F_t), lambda i: (0, 0)),                 # empirical mean
            pl.BlockSpec((5, F_t, 3 * G), lambda i: (0, 0, 0)),       # F_t-row weights
            pl.BlockSpec((wrows, 3 * G), lambda i: (0, 0)),           # big weight blob
            pl.BlockSpec((8, 3 * G), lambda i: (0, 0)),               # bias blob
        ],
        out_specs=pl.BlockSpec((Bt, CLS_PAD), lambda i: (i, 0)),
        compiler_params=pltpu.CompilerParams(
            dimension_semantics=("parallel",),          # megacore split on v7x
            vmem_limit_bytes=32 * 1024 * 1024),         # raise for large block_b (v6e)
    )(x_pad, series, mean2d, pk["wft"], pk["wbig"], pk["bias"])

    return logits_padded[:B, :n_cls]


# ---------------------------------------------------------------------------
# Pure-JAX reference (natural weight layout) for a correctness check
# ---------------------------------------------------------------------------
def forward_ref(params, inputs):
    nat, meta = params["nat"], params["meta"]
    H = meta["H"]
    x = inputs["X"]
    values = inputs["X_t"]
    masks = inputs["X_t_mask"]
    deltas = inputs["deltaT_t"]
    locf = inputs["X_t_filledLOCF"]
    mean = inputs["empirical_mean"]
    B, T, _ = values.shape

    s = jax.nn.relu(x @ nat["W_s0"] + nat["b_s0"])
    s = jax.nn.relu(s @ nat["W_s1"] + nat["b_s1"])

    alpha = jax.nn.softmax(values @ nat["W_att"] + nat["b_att"], axis=-1)
    xa = alpha * values
    gx = jnp.exp(-jax.nn.relu(deltas @ nat["W_gx"] + nat["b_gx"]))
    gh = jnp.exp(-jax.nn.relu(deltas @ nat["W_gh"] + nat["b_gh"]))
    x_hat = masks * xa + (1 - masks) * (gx * locf + (1 - gx) * mean)
    pre = x_hat @ nat["W_x"] + masks @ nat["W_m"] + nat["b_xm"]      # (B,T,3H)

    h = jnp.zeros((B, H), F32)
    for t in range(T):
        hd = gh[:, t, :] * h
        hp = hd @ nat["W_h"]
        pt = pre[:, t, :]
        z = jax.nn.sigmoid(pt[:, :H] + hp[:, :H])
        r = jax.nn.sigmoid(pt[:, H:2 * H] + hp[:, H:2 * H])
        n = jnp.tanh(pt[:, 2 * H:] + r * hp[:, 2 * H:])
        h = (1 - z) * hd + z * n

    return s @ nat["W_cls_s"] + h @ nat["W_cls_h"] + nat["b_cls"]


# ---------------------------------------------------------------------------
if __name__ == "__main__":
    B, T = 2, 8            # batch, n_steps
    F_t, F_s = 4, 6        # temporal features, static features
    H = 64                 # rnn_hidden_size
    n_classes = 4

    params = init_params(42, F_s, F_t, H, n_classes)

    key = jax.random.PRNGKey(0)
    k = jax.random.split(key, 6)
    inputs = {
        "X": jax.random.normal(k[0], (B, F_s), F32),
        "X_t": jax.random.normal(k[1], (B, T, F_t), F32),
        "X_t_mask": (jax.random.uniform(k[2], (B, T, F_t)) > 0.3).astype(F32),
        "deltaT_t": jax.random.uniform(k[3], (B, T, F_t), F32, 0.0, 2.0),
        "empirical_mean": jax.random.normal(k[4], (F_t,), F32),
        "X_t_filledLOCF": jax.random.normal(k[5], (B, T, F_t), F32),
    }

    logits = forward(params, inputs)
    jax.block_until_ready(logits)
    assert logits.shape == (B, n_classes)

    ref = forward_ref(params, inputs)
    err = float(jnp.max(jnp.abs(logits - ref)))
    assert jnp.allclose(logits, ref, atol=1e-2, rtol=1e-2), f"max abs err {err}"
    print("KERNEL_OK")
</pallas_src>

<mosaic_0001>
module attributes {stable_mosaic.version = 11 : i64} {
  func.func @fused_forward_kernel(%arg0: i32, %arg1: memref<8x8xf32, #tpu.memory_space<vmem>>, %arg2: memref<4x8x8x4xf32, #tpu.memory_space<vmem>>, %arg3: memref<1x4xf32, #tpu.memory_space<vmem>>, %arg4: memref<5x4x384xf32, #tpu.memory_space<vmem>>, %arg5: memref<200x384xf32, #tpu.memory_space<vmem>>, %arg6: memref<8x384xf32, #tpu.memory_space<vmem>>, %arg7: memref<8x128xf32, #tpu.memory_space<vmem>>) attributes {dimension_semantics = [#tpu.dimension_semantics<parallel>], iteration_bounds = array<i64: 1>, scalar_prefetch = 0 : i64, scratch_operands = 0 : i64, tpu.core_type = #tpu.core_type<tc>, window_params = [{transform_indices = @transform_0, window_bounds = array<i64: 8, 8>}, {transform_indices = @transform_1, window_bounds = array<i64: 4, 8, 8, 4>}, {pipeline_mode = #tpu.pipeline_mode<synchronous>, transform_indices = @transform_2, window_bounds = array<i64: 1, 4>}, {pipeline_mode = #tpu.pipeline_mode<synchronous>, transform_indices = @transform_3, window_bounds = array<i64: 5, 4, 384>}, {pipeline_mode = #tpu.pipeline_mode<synchronous>, transform_indices = @transform_4, window_bounds = array<i64: 200, 384>}, {pipeline_mode = #tpu.pipeline_mode<synchronous>, transform_indices = @transform_5, window_bounds = array<i64: 8, 384>}, {transform_indices = @transform_6, window_bounds = array<i64: 8, 128>}]} {
    %c0 = arith.constant 0 : index
    %c0_0 = arith.constant 0 : index
    %0 = vector.load %arg5[%c0, %c0_0] : memref<200x384xf32, #tpu.memory_space<vmem>>, vector<8x32xf32>
    %c8 = arith.constant 8 : index
    %c0_1 = arith.constant 0 : index
    %1 = vector.load %arg5[%c8, %c0_1] : memref<200x384xf32, #tpu.memory_space<vmem>>, vector<32x32xf32>
    %c40 = arith.constant 40 : index
    %c0_2 = arith.constant 0 : index
    %2 = vector.load %arg5[%c40, %c0_2] : memref<200x384xf32, #tpu.memory_space<vmem>>, vector<64x384xf32>
    %c104 = arith.constant 104 : index
    %c0_3 = arith.constant 0 : index
    %3 = vector.load %arg5[%c104, %c0_3] : memref<200x384xf32, #tpu.memory_space<vmem>>, vector<32x128xf32>
    %c136 = arith.constant 136 : index
    %c0_4 = arith.constant 0 : index
    %4 = vector.load %arg5[%c136, %c0_4] : memref<200x384xf32, #tpu.memory_space<vmem>>, vector<64x128xf32>
    %c0_5 = arith.constant 0 : index
    %c0_6 = arith.constant 0 : index
    %c0_7 = arith.constant 0 : index
    %5 = vector.load %arg4[%c0_5, %c0_6, %c0_7] : memref<5x4x384xf32, #tpu.memory_space<vmem>>, vector<1x4x384xf32>
    %6 = vector.shape_cast %5 : vector<1x4x384xf32> to vector<4x384xf32>
    %7 = vector.extract_strided_slice %6 {offsets = [0, 0], sizes = [4, 4], strides = [1, 1]} : vector<4x384xf32> to vector<4x4xf32>
    %c1 = arith.constant 1 : index
    %c0_8 = arith.constant 0 : index
    %c0_9 = arith.constant 0 : index
    %8 = vector.load %arg4[%c1, %c0_8, %c0_9] : memref<5x4x384xf32, #tpu.memory_space<vmem>>, vector<1x4x384xf32>
    %9 = vector.shape_cast %8 : vector<1x4x384xf32> to vector<4x384xf32>
    %10 = vector.extract_strided_slice %9 {offsets = [0, 0], sizes = [4, 4], strides = [1, 1]} : vector<4x384xf32> to vector<4x4xf32>
    %c2 = arith.constant 2 : index
    %c0_10 = arith.constant 0 : index
    %c0_11 = arith.constant 0 : index
    %11 = vector.load %arg4[%c2, %c0_10, %c0_11] : memref<5x4x384xf32, #tpu.memory_space<vmem>>, vector<1x4x384xf32>
    %12 = vector.shape_cast %11 : vector<1x4x384xf32> to vector<4x384xf32>
    %13 = vector.extract_strided_slice %12 {offsets = [0, 0], sizes = [4, 64], strides = [1, 1]} : vector<4x384xf32> to vector<4x64xf32>
    %c3 = arith.constant 3 : index
    %c0_12 = arith.constant 0 : index
    %c0_13 = arith.constant 0 : index
    %14 = vector.load %arg4[%c3, %c0_12, %c0_13] : memref<5x4x384xf32, #tpu.memory_space<vmem>>, vector<1x4x384xf32>
    %15 = vector.shape_cast %14 : vector<1x4x384xf32> to vector<4x384xf32>
    %c4 = arith.constant 4 : index
    %c0_14 = arith.constant 0 : index
    %c0_15 = arith.constant 0 : index
    %16 = vector.load %arg4[%c4, %c0_14, %c0_15] : memref<5x4x384xf32, #tpu.memory_space<vmem>>, vector<1x4x384xf32>
    %17 = vector.shape_cast %16 : vector<1x4x384xf32> to vector<4x384xf32>
    %c0_16 = arith.constant 0 : index
    %c0_17 = arith.constant 0 : index
    %18 = vector.load %arg6[%c0_16, %c0_17] : memref<8x384xf32, #tpu.memory_space<vmem>>, vector<1x32xf32>
    %c1_18 = arith.constant 1 : index
    %c0_19 = arith.constant 0 : index
    %19 = vector.load %arg6[%c1_18, %c0_19] : memref<8x384xf32, #tpu.memory_space<vmem>>, vector<1x32xf32>
    %c2_20 = arith.constant 2 : index
    %c0_21 = arith.constant 0 : index
    %20 = vector.load %arg6[%c2_20, %c0_21] : memref<8x384xf32, #tpu.memory_space<vmem>>, vector<1x4xf32>
    %c3_22 = arith.constant 3 : index
    %c0_23 = arith.constant 0 : index
    %21 = vector.load %arg6[%c3_22, %c0_23] : memref<8x384xf32, #tpu.memory_space<vmem>>, vector<1x4xf32>
    %c4_24 = arith.constant 4 : index
    %c0_25 = arith.constant 0 : index
    %22 = vector.load %arg6[%c4_24, %c0_25] : memref<8x384xf32, #tpu.memory_space<vmem>>, vector<1x64xf32>
    %c5 = arith.constant 5 : index
    %c0_26 = arith.constant 0 : index
    %23 = vector.load %arg6[%c5, %c0_26] : memref<8x384xf32, #tpu.memory_space<vmem>>, vector<1x384xf32>
    %c6 = arith.constant 6 : index
    %c0_27 = arith.constant 0 : index
    %24 = vector.load %arg6[%c6, %c0_27] : memref<8x384xf32, #tpu.memory_space<vmem>>, vector<1x128xf32>
    %c0_28 = arith.constant 0 : index
    %c0_29 = arith.constant 0 : index
    %25 = vector.load %arg1[%c0_28, %c0_29] : memref<8x8xf32, #tpu.memory_space<vmem>>, vector<8x8xf32>
    %cst = arith.constant dense<0.000000e+00> : vector<8x32xf32>
    %26 = tpu.matmul %25, %0, %cst {dimension_numbers = #tpu.dot_dimension_numbers<[1], [0], [0], [1], [0, 0, 1, 1], [], []>} : vector<8x8xf32>, vector<8x32xf32>, vector<8x32xf32> -> vector<8x32xf32>
    %27 = vector.broadcast %18 : vector<1x32xf32> to vector<8x32xf32>
    %28 = arith.addf %26, %27 : vector<8x32xf32>
    %cst_30 = arith.constant 0.000000e+00 : f32
    %29 = vector.broadcast %cst_30 : f32 to vector<8x32xf32>
    %30 = arith.maximumf %28, %29 : vector<8x32xf32>
    %cst_31 = arith.constant dense<0.000000e+00> : vector<8x32xf32>
    %31 = tpu.matmul %30, %1, %cst_31 {dimension_numbers = #tpu.dot_dimension_numbers<[1], [0], [0], [1], [0, 0, 1, 1], [], []>} : vector<8x32xf32>, vector<32x32xf32>, vector<8x32xf32> -> vector<8x32xf32>
    %32 = vector.broadcast %19 : vector<1x32xf32> to vector<8x32xf32>
    %33 = arith.addf %31, %32 : vector<8x32xf32>
    %cst_32 = arith.constant 0.000000e+00 : f32
    %34 = vector.broadcast %cst_32 : f32 to vector<8x32xf32>
    %35 = arith.maximumf %33, %34 : vector<8x32xf32>
    %c0_33 = arith.constant 0 : index
    %c0_34 = arith.constant 0 : index
    %c0_35 = arith.constant 0 : index
    %c0_36 = arith.constant 0 : index
    %36 = vector.load %arg2[%c0_33, %c0_34, %c0_35, %c0_36] : memref<4x8x8x4xf32, #tpu.memory_space<vmem>>, vector<1x8x8x4xf32>
    %37 = vector.shape_cast %36 : vector<1x8x8x4xf32> to vector<8x8x4xf32>
    %38 = vector.shape_cast %37 : vector<8x8x4xf32> to vector<64x4xf32>
    %c1_37 = arith.constant 1 : index
    %c0_38 = arith.constant 0 : index
    %c0_39 = arith.constant 0 : index
    %c0_40 = arith.constant 0 : index
    %39 = vector.load %arg2[%c1_37, %c0_38, %c0_39, %c0_40] : memref<4x8x8x4xf32, #tpu.memory_space<vmem>>, vector<1x8x8x4xf32>
    %40 = vector.shape_cast %39 : vector<1x8x8x4xf32> to vector<8x8x4xf32>
    %41 = vector.shape_cast %40 : vector<8x8x4xf32> to vector<64x4xf32>
    %c2_41 = arith.constant 2 : index
    %c0_42 = arith.constant 0 : index
    %c0_43 = arith.constant 0 : index
    %c0_44 = arith.constant 0 : index
    %42 = vector.load %arg2[%c2_41, %c0_42, %c0_43, %c0_44] : memref<4x8x8x4xf32, #tpu.memory_space<vmem>>, vector<1x8x8x4xf32>
    %43 = vector.shape_cast %42 : vector<1x8x8x4xf32> to vector<8x8x4xf32>
    %44 = vector.shape_cast %43 : vector<8x8x4xf32> to vector<64x4xf32>
    %c3_45 = arith.constant 3 : index
    %c0_46 = arith.constant 0 : index
    %c0_47 = arith.constant 0 : index
    %c0_48 = arith.constant 0 : index
    %45 = vector.load %arg2[%c3_45, %c0_46, %c0_47, %c0_48] : memref<4x8x8x4xf32, #tpu.memory_space<vmem>>, vector<1x8x8x4xf32>
    %46 = vector.shape_cast %45 : vector<1x8x8x4xf32> to vector<8x8x4xf32>
    %47 = vector.shape_cast %46 : vector<8x8x4xf32> to vector<64x4xf32>
    %cst_49 = arith.constant dense<0.000000e+00> : vector<64x4xf32>
    %48 = tpu.matmul %38, %7, %cst_49 {dimension_numbers = #tpu.dot_dimension_numbers<[1], [0], [0], [1], [0, 0, 1, 1], [], []>} : vector<64x4xf32>, vector<4x4xf32>, vector<64x4xf32> -> vector<64x4xf32>
    %49 = vector.broadcast %20 : vector<1x4xf32> to vector<64x4xf32>
    %50 = arith.addf %48, %49 : vector<64x4xf32>
    %cst_50 = arith.constant dense<0xFF800000> : vector<64xf32>
    %51 = vector.multi_reduction <maximumf>, %50, %cst_50 [1] : vector<64x4xf32> to vector<64xf32>
    %52 = vector.shape_cast %51 : vector<64xf32> to vector<64x1xf32>
    %53 = vector.broadcast %52 : vector<64x1xf32> to vector<64x4xf32>
    %54 = arith.subf %50, %53 : vector<64x4xf32>
    %55 = math.exp %54 : vector<64x4xf32>
    %cst_51 = arith.constant dense<0.000000e+00> : vector<64xf32>
    %56 = vector.multi_reduction <add>, %55, %cst_51 [1] : vector<64x4xf32> to vector<64xf32>
    %57 = vector.shape_cast %56 : vector<64xf32> to vector<64x1xf32>
    %58 = vector.broadcast %57 : vector<64x1xf32> to vector<64x4xf32>
    %59 = arith.divf %55, %58 : vector<64x4xf32>
    %60 = arith.mulf %59, %38 : vector<64x4xf32>
    %cst_52 = arith.constant dense<0.000000e+00> : vector<64x4xf32>
    %61 = tpu.matmul %44, %10, %cst_52 {dimension_numbers = #tpu.dot_dimension_numbers<[1], [0], [0], [1], [0, 0, 1, 1], [], []>} : vector<64x4xf32>, vector<4x4xf32>, vector<64x4xf32> -> vector<64x4xf32>
    %62 = vector.broadcast %21 : vector<1x4xf32> to vector<64x4xf32>
    %63 = arith.addf %61, %62 : vector<64x4xf32>
    %cst_53 = arith.constant 0.000000e+00 : f32
    %64 = vector.broadcast %cst_53 : f32 to vector<64x4xf32>
    %65 = arith.maximumf %63, %64 : vector<64x4xf32>
    %cst_54 = arith.constant 0.000000e+00 : f32
    %66 = vector.broadcast %cst_54 : f32 to vector<64x4xf32>
    %67 = arith.subf %66, %65 : vector<64x4xf32>
    %68 = math.exp %67 : vector<64x4xf32>
    %cst_55 = arith.constant dense<0.000000e+00> : vector<64x64xf32>
    %69 = tpu.matmul %44, %13, %cst_55 {dimension_numbers = #tpu.dot_dimension_numbers<[1], [0], [0], [1], [0, 0, 1, 1], [], []>} : vector<64x4xf32>, vector<4x64xf32>, vector<64x64xf32> -> vector<64x64xf32>
    %70 = vector.broadcast %22 : vector<1x64xf32> to vector<64x64xf32>
    %71 = arith.addf %69, %70 : vector<64x64xf32>
    %cst_56 = arith.constant 0.000000e+00 : f32
    %72 = vector.broadcast %cst_56 : f32 to vector<64x64xf32>
    %73 = arith.maximumf %71, %72 : vector<64x64xf32>
    %cst_57 = arith.constant 0.000000e+00 : f32
    %74 = vector.broadcast %cst_57 : f32 to vector<64x64xf32>
    %75 = arith.subf %74, %73 : vector<64x64xf32>
    %76 = math.exp %75 : vector<64x64xf32>
    %c0_58 = arith.constant 0 : index
    %c0_59 = arith.constant 0 : index
    %77 = vector.load %arg3[%c0_58, %c0_59] : memref<1x4xf32, #tpu.memory_space<vmem>>, vector<1x4xf32>
    %78 = arith.mulf %41, %60 : vector<64x4xf32>
    %cst_60 = arith.constant 1.000000e+00 : f32
    %79 = vector.broadcast %cst_60 : f32 to vector<64x4xf32>
    %80 = arith.subf %79, %41 : vector<64x4xf32>
    %81 = arith.mulf %68, %47 : vector<64x4xf32>
    %cst_61 = arith.constant 1.000000e+00 : f32
    %82 = vector.broadcast %cst_61 : f32 to vector<64x4xf32>
    %83 = arith.subf %82, %68 : vector<64x4xf32>
    %84 = vector.broadcast %77 : vector<1x4xf32> to vector<64x4xf32>
    %85 = arith.mulf %83, %84 : vector<64x4xf32>
    %86 = arith.addf %81, %85 : vector<64x4xf32>
    %87 = arith.mulf %80, %86 : vector<64x4xf32>
    %88 = arith.addf %78, %87 : vector<64x4xf32>
    %cst_62 = arith.constant dense<0.000000e+00> : vector<64x384xf32>
    %89 = tpu.matmul %88, %15, %cst_62 {dimension_numbers = #tpu.dot_dimension_numbers<[1], [0], [0], [1], [0, 0, 1, 1], [], []>} : vector<64x4xf32>, vector<4x384xf32>, vector<64x384xf32> -> vector<64x384xf32>
    %cst_63 = arith.constant dense<0.000000e+00> : vector<64x384xf32>
    %90 = tpu.matmul %41, %17, %cst_63 {dimension_numbers = #tpu.dot_dimension_numbers<[1], [0], [0], [1], [0, 0, 1, 1], [], []>} : vector<64x4xf32>, vector<4x384xf32>, vector<64x384xf32> -> vector<64x384xf32>
    %91 = arith.addf %89, %90 : vector<64x384xf32>
    %92 = vector.broadcast %23 : vector<1x384xf32> to vector<64x384xf32>
    %93 = arith.addf %91, %92 : vector<64x384xf32>
    %cst_64 = arith.constant 0.000000e+00 : f32
    %94 = vector.broadcast %cst_64 : f32 to vector<8x64xf32>
    %95 = vector.extract_strided_slice %93 {offsets = [0, 0], sizes = [8, 384], strides = [1, 1]} : vector<64x384xf32> to vector<8x384xf32>
    %96 = vector.extract_strided_slice %76 {offsets = [0, 0], sizes = [8, 64], strides = [1, 1]} : vector<64x64xf32> to vector<8x64xf32>
    %97 = arith.mulf %96, %94 : vector<8x64xf32>
    %cst_65 = arith.constant dense<0.000000e+00> : vector<8x384xf32>
    %98 = tpu.matmul %97, %2, %cst_65 {dimension_numbers = #tpu.dot_dimension_numbers<[1], [0], [0], [1], [0, 0, 1, 1], [], []>} : vector<8x64xf32>, vector<64x384xf32>, vector<8x384xf32> -> vector<8x384xf32>
    %99 = vector.extract_strided_slice %95 {offsets = [0, 0], sizes = [8, 64], strides = [1, 1]} : vector<8x384xf32> to vector<8x64xf32>
    %100 = vector.extract_strided_slice %98 {offsets = [0, 0], sizes = [8, 64], strides = [1, 1]} : vector<8x384xf32> to vector<8x64xf32>
    %101 = arith.addf %99, %100 : vector<8x64xf32>
    %102 = arith.negf %101 : vector<8x64xf32>
    %103 = math.exp %102 : vector<8x64xf32>
    %cst_66 = arith.constant 1.000000e+00 : f32
    %104 = vector.broadcast %cst_66 : f32 to vector<8x64xf32>
    %105 = arith.addf %104, %103 : vector<8x64xf32>
    %106 = arith.divf %104, %105 : vector<8x64xf32>
    %107 = vector.extract_strided_slice %95 {offsets = [0, 128], sizes = [8, 64], strides = [1, 1]} : vector<8x384xf32> to vector<8x64xf32>
    %108 = vector.extract_strided_slice %98 {offsets = [0, 128], sizes = [8, 64], strides = [1, 1]} : vector<8x384xf32> to vector<8x64xf32>
    %109 = arith.addf %107, %108 : vector<8x64xf32>
    %110 = arith.negf %109 : vector<8x64xf32>
    %111 = math.exp %110 : vector<8x64xf32>
    %cst_67 = arith.constant 1.000000e+00 : f32
    %112 = vector.broadcast %cst_67 : f32 to vector<8x64xf32>
    %113 = arith.addf %112, %111 : vector<8x64xf32>
    %114 = arith.divf %112, %113 : vector<8x64xf32>
    %115 = vector.extract_strided_slice %95 {offsets = [0, 256], sizes = [8, 64], strides = [1, 1]} : vector<8x384xf32> to vector<8x64xf32>
    %116 = vector.extract_strided_slice %98 {offsets = [0, 256], sizes = [8, 64], strides = [1, 1]} : vector<8x384xf32> to vector<8x64xf32>
    %117 = arith.mulf %114, %116 : vector<8x64xf32>
    %118 = arith.addf %115, %117 : vector<8x64xf32>
    %119 = math.tanh %118 : vector<8x64xf32>
    %cst_68 = arith.constant 1.000000e+00 : f32
    %120 = vector.broadcast %cst_68 : f32 to vector<8x64xf32>
    %121 = arith.subf %120, %106 : vector<8x64xf32>
    %122 = arith.mulf %121, %97 : vector<8x64xf32>
    %123 = arith.mulf %106, %119 : vector<8x64xf32>
    %124 = arith.addf %122, %123 : vector<8x64xf32>
    %125 = vector.extract_strided_slice %93 {offsets = [8, 0], sizes = [8, 384], strides = [1, 1]} : vector<64x384xf32> to vector<8x384xf32>
    %126 = vector.extract_strided_slice %76 {offsets = [8, 0], sizes = [8, 64], strides = [1, 1]} : vector<64x64xf32> to vector<8x64xf32>
    %127 = arith.mulf %126, %124 : vector<8x64xf32>
    %cst_69 = arith.constant dense<0.000000e+00> : vector<8x384xf32>
    %128 = tpu.matmul %127, %2, %cst_69 {dimension_numbers = #tpu.dot_dimension_numbers<[1], [0], [0], [1], [0, 0, 1, 1], [], []>} : vector<8x64xf32>, vector<64x384xf32>, vector<8x384xf32> -> vector<8x384xf32>
    %129 = vector.extract_strided_slice %125 {offsets = [0, 0], sizes = [8, 64], strides = [1, 1]} : vector<8x384xf32> to vector<8x64xf32>
    %130 = vector.extract_strided_slice %128 {offsets = [0, 0], sizes = [8, 64], strides = [1, 1]} : vector<8x384xf32> to vector<8x64xf32>
    %131 = arith.addf %129, %130 : vector<8x64xf32>
    %132 = arith.negf %131 : vector<8x64xf32>
    %133 = math.exp %132 : vector<8x64xf32>
    %cst_70 = arith.constant 1.000000e+00 : f32
    %134 = vector.broadcast %cst_70 : f32 to vector<8x64xf32>
    %135 = arith.addf %134, %133 : vector<8x64xf32>
    %136 = arith.divf %134, %135 : vector<8x64xf32>
    %137 = vector.extract_strided_slice %125 {offsets = [0, 128], sizes = [8, 64], strides = [1, 1]} : vector<8x384xf32> to vector<8x64xf32>
    %138 = vector.extract_strided_slice %128 {offsets = [0, 128], sizes = [8, 64], strides = [1, 1]} : vector<8x384xf32> to vector<8x64xf32>
    %139 = arith.addf %137, %138 : vector<8x64xf32>
    %140 = arith.negf %139 : vector<8x64xf32>
    %141 = math.exp %140 : vector<8x64xf32>
    %cst_71 = arith.constant 1.000000e+00 : f32
    %142 = vector.broadcast %cst_71 : f32 to vector<8x64xf32>
    %143 = arith.addf %142, %141 : vector<8x64xf32>
    %144 = arith.divf %142, %143 : vector<8x64xf32>
    %145 = vector.extract_strided_slice %125 {offsets = [0, 256], sizes = [8, 64], strides = [1, 1]} : vector<8x384xf32> to vector<8x64xf32>
    %146 = vector.extract_strided_slice %128 {offsets = [0, 256], sizes = [8, 64], strides = [1, 1]} : vector<8x384xf32> to vector<8x64xf32>
    %147 = arith.mulf %144, %146 : vector<8x64xf32>
    %148 = arith.addf %145, %147 : vector<8x64xf32>
    %149 = math.tanh %148 : vector<8x64xf32>
    %cst_72 = arith.constant 1.000000e+00 : f32
    %150 = vector.broadcast %cst_72 : f32 to vector<8x64xf32>
    %151 = arith.subf %150, %136 : vector<8x64xf32>
    %152 = arith.mulf %151, %127 : vector<8x64xf32>
    %153 = arith.mulf %136, %149 : vector<8x64xf32>
    %154 = arith.addf %152, %153 : vector<8x64xf32>
    %155 = vector.extract_strided_slice %93 {offsets = [16, 0], sizes = [8, 384], strides = [1, 1]} : vector<64x384xf32> to vector<8x384xf32>
    %156 = vector.extract_strided_slice %76 {offsets = [16, 0], sizes = [8, 64], strides = [1, 1]} : vector<64x64xf32> to vector<8x64xf32>
    %157 = arith.mulf %156, %154 : vector<8x64xf32>
    %cst_73 = arith.constant dense<0.000000e+00> : vector<8x384xf32>
    %158 = tpu.matmul %157, %2, %cst_73 {dimension_numbers = #tpu.dot_dimension_numbers<[1], [0], [0], [1], [0, 0, 1, 1], [], []>} : vector<8x64xf32>, vector<64x384xf32>, vector<8x384xf32> -> vector<8x384xf32>
    %159 = vector.extract_strided_slice %155 {offsets = [0, 0], sizes = [8, 64], strides = [1, 1]} : vector<8x384xf32> to vector<8x64xf32>
    %160 = vector.extract_strided_slice %158 {offsets = [0, 0], sizes = [8, 64], strides = [1, 1]} : vector<8x384xf32> to vector<8x64xf32>
    %161 = arith.addf %159, %160 : vector<8x64xf32>
    %162 = arith.negf %161 : vector<8x64xf32>
    %163 = math.exp %162 : vector<8x64xf32>
    %cst_74 = arith.constant 1.000000e+00 : f32
    %164 = vector.broadcast %cst_74 : f32 to vector<8x64xf32>
    %165 = arith.addf %164, %163 : vector<8x64xf32>
    %166 = arith.divf %164, %165 : vector<8x64xf32>
    %167 = vector.extract_strided_slice %155 {offsets = [0, 128], sizes = [8, 64], strides = [1, 1]} : vector<8x384xf32> to vector<8x64xf32>
    %168 = vector.extract_strided_slice %158 {offsets = [0, 128], sizes = [8, 64], strides = [1, 1]} : vector<8x384xf32> to vector<8x64xf32>
    %169 = arith.addf %167, %168 : vector<8x64xf32>
    %170 = arith.negf %169 : vector<8x64xf32>
    %171 = math.exp %170 : vector<8x64xf32>
    %cst_75 = arith.constant 1.000000e+00 : f32
    %172 = vector.broadcast %cst_75 : f32 to vector<8x64xf32>
    %173 = arith.addf %172, %171 : vector<8x64xf32>
    %174 = arith.divf %172, %173 : vector<8x64xf32>
    %175 = vector.extract_strided_slice %155 {offsets = [0, 256], sizes = [8, 64], strides = [1, 1]} : vector<8x384xf32> to vector<8x64xf32>
    %176 = vector.extract_strided_slice %158 {offsets = [0, 256], sizes = [8, 64], strides = [1, 1]} : vector<8x384xf32> to vector<8x64xf32>
    %177 = arith.mulf %174, %176 : vector<8x64xf32>
    %178 = arith.addf %175, %177 : vector<8x64xf32>
    %179 = math.tanh %178 : vector<8x64xf32>
    %cst_76 = arith.constant 1.000000e+00 : f32
    %180 = vector.broadcast %cst_76 : f32 to vector<8x64xf32>
    %181 = arith.subf %180, %166 : vector<8x64xf32>
    %182 = arith.mulf %181, %157 : vector<8x64xf32>
    %183 = arith.mulf %166, %179 : vector<8x64xf32>
    %184 = arith.addf %182, %183 : vector<8x64xf32>
    %185 = vector.extract_strided_slice %93 {offsets = [24, 0], sizes = [8, 384], strides = [1, 1]} : vector<64x384xf32> to vector<8x384xf32>
    %186 = vector.extract_strided_slice %76 {offsets = [24, 0], sizes = [8, 64], strides = [1, 1]} : vector<64x64xf32> to vector<8x64xf32>
    %187 = arith.mulf %186, %184 : vector<8x64xf32>
    %cst_77 = arith.constant dense<0.000000e+00> : vector<8x384xf32>
    %188 = tpu.matmul %187, %2, %cst_77 {dimension_numbers = #tpu.dot_dimension_numbers<[1], [0], [0], [1], [0, 0, 1, 1], [], []>} : vector<8x64xf32>, vector<64x384xf32>, vector<8x384xf32> -> vector<8x384xf32>
    %189 = vector.extract_strided_slice %185 {offsets = [0, 0], sizes = [8, 64], strides = [1, 1]} : vector<8x384xf32> to vector<8x64xf32>
    %190 = vector.extract_strided_slice %188 {offsets = [0, 0], sizes = [8, 64], strides = [1, 1]} : vector<8x384xf32> to vector<8x64xf32>
    %191 = arith.addf %189, %190 : vector<8x64xf32>
    %192 = arith.negf %191 : vector<8x64xf32>
    %193 = math.exp %192 : vector<8x64xf32>
    %cst_78 = arith.constant 1.000000e+00 : f32
    %194 = vector.broadcast %cst_78 : f32 to vector<8x64xf32>
    %195 = arith.addf %194, %193 : vector<8x64xf32>
    %196 = arith.divf %194, %195 : vector<8x64xf32>
    %197 = vector.extract_strided_slice %185 {offsets = [0, 128], sizes = [8, 64], strides = [1, 1]} : vector<8x384xf32> to vector<8x64xf32>
    %198 = vector.extract_strided_slice %188 {offsets = [0, 128], sizes = [8, 64], strides = [1, 1]} : vector<8x384xf32> to vector<8x64xf32>
    %199 = arith.addf %197, %198 : vector<8x64xf32>
    %200 = arith.negf %199 : vector<8x64xf32>
    %201 = math.exp %200 : vector<8x64xf32>
    %cst_79 = arith.constant 1.000000e+00 : f32
    %202 = vector.broadcast %cst_79 : f32 to vector<8x64xf32>
    %203 = arith.addf %202, %201 : vector<8x64xf32>
    %204 = arith.divf %202, %203 : vector<8x64xf32>
    %205 = vector.extract_strided_slice %185 {offsets = [0, 256], sizes = [8, 64], strides = [1, 1]} : vector<8x384xf32> to vector<8x64xf32>
    %206 = vector.extract_strided_slice %188 {offsets = [0, 256], sizes = [8, 64], strides = [1, 1]} : vector<8x384xf32> to vector<8x64xf32>
    %207 = arith.mulf %204, %206 : vector<8x64xf32>
    %208 = arith.addf %205, %207 : vector<8x64xf32>
    %209 = math.tanh %208 : vector<8x64xf32>
    %cst_80 = arith.constant 1.000000e+00 : f32
    %210 = vector.broadcast %cst_80 : f32 to vector<8x64xf32>
    %211 = arith.subf %210, %196 : vector<8x64xf32>
    %212 = arith.mulf %211, %187 : vector<8x64xf32>
    %213 = arith.mulf %196, %209 : vector<8x64xf32>
    %214 = arith.addf %212, %213 : vector<8x64xf32>
    %215 = vector.extract_strided_slice %93 {offsets = [32, 0], sizes = [8, 384], strides = [1, 1]} : vector<64x384xf32> to vector<8x384xf32>
    %216 = vector.extract_strided_slice %76 {offsets = [32, 0], sizes = [8, 64], strides = [1, 1]} : vector<64x64xf32> to vector<8x64xf32>
    %217 = arith.mulf %216, %214 : vector<8x64xf32>
    %cst_81 = arith.constant dense<0.000000e+00> : vector<8x384xf32>
    %218 = tpu.matmul %217, %2, %cst_81 {dimension_numbers = #tpu.dot_dimension_numbers<[1], [0], [0], [1], [0, 0, 1, 1], [], []>} : vector<8x64xf32>, vector<64x384xf32>, vector<8x384xf32> -> vector<8x384xf32>
    %219 = vector.extract_strided_slice %215 {offsets = [0, 0], sizes = [8, 64], strides = [1, 1]} : vector<8x384xf32> to vector<8x64xf32>
    %220 = vector.extract_strided_slice %218 {offsets = [0, 0], sizes = [8, 64], strides = [1, 1]} : vector<8x384xf32> to vector<8x64xf32>
    %221 = arith.addf %219, %220 : vector<8x64xf32>
    %222 = arith.negf %221 : vector<8x64xf32>
    %223 = math.exp %222 : vector<8x64xf32>
    %cst_82 = arith.constant 1.000000e+00 : f32
    %224 = vector.broadcast %cst_82 : f32 to vector<8x64xf32>
    %225 = arith.addf %224, %223 : vector<8x64xf32>
    %226 = arith.divf %224, %225 : vector<8x64xf32>
    %227 = vector.extract_strided_slice %215 {offsets = [0, 128], sizes = [8, 64], strides = [1, 1]} : vector<8x384xf32> to vector<8x64xf32>
    %228 = vector.extract_strided_slice %218 {offsets = [0, 128], sizes = [8, 64], strides = [1, 1]} : vector<8x384xf32> to vector<8x64xf32>
    %229 = arith.addf %227, %228 : vector<8x64xf32>
    %230 = arith.negf %229 : vector<8x64xf32>
    %231 = math.exp %230 : vector<8x64xf32>
    %cst_83 = arith.constant 1.000000e+00 : f32
    %232 = vector.broadcast %cst_83 : f32 to vector<8x64xf32>
    %233 = arith.addf %232, %231 : vector<8x64xf32>
    %234 = arith.divf %232, %233 : vector<8x64xf32>
    %235 = vector.extract_strided_slice %215 {offsets = [0, 256], sizes = [8, 64], strides = [1, 1]} : vector<8x384xf32> to vector<8x64xf32>
    %236 = vector.extract_strided_slice %218 {offsets = [0, 256], sizes = [8, 64], strides = [1, 1]} : vector<8x384xf32> to vector<8x64xf32>
    %237 = arith.mulf %234, %236 : vector<8x64xf32>
    %238 = arith.addf %235, %237 : vector<8x64xf32>
    %239 = math.tanh %238 : vector<8x64xf32>
    %cst_84 = arith.constant 1.000000e+00 : f32
    %240 = vector.broadcast %cst_84 : f32 to vector<8x64xf32>
    %241 = arith.subf %240, %226 : vector<8x64xf32>
    %242 = arith.mulf %241, %217 : vector<8x64xf32>
    %243 = arith.mulf %226, %239 : vector<8x64xf32>
    %244 = arith.addf %242, %243 : vector<8x64xf32>
    %245 = vector.extract_strided_slice %93 {offsets = [40, 0], sizes = [8, 384], strides = [1, 1]} : vector<64x384xf32> to vector<8x384xf32>
    %246 = vector.extract_strided_slice %76 {offsets = [40, 0], sizes = [8, 64], strides = [1, 1]} : vector<64x64xf32> to vector<8x64xf32>
    %247 = arith.mulf %246, %244 : vector<8x64xf32>
    %cst_85 = arith.constant dense<0.000000e+00> : vector<8x384xf32>
    %248 = tpu.matmul %247, %2, %cst_85 {dimension_numbers = #tpu.dot_dimension_numbers<[1], [0], [0], [1], [0, 0, 1, 1], [], []>} : vector<8x64xf32>, vector<64x384xf32>, vector<8x384xf32> -> vector<8x384xf32>
    %249 = vector.extract_strided_slice %245 {offsets = [0, 0], sizes = [8, 64], strides = [1, 1]} : vector<8x384xf32> to vector<8x64xf32>
    %250 = vector.extract_strided_slice %248 {offsets = [0, 0], sizes = [8, 64], strides = [1, 1]} : vector<8x384xf32> to vector<8x64xf32>
    %251 = arith.addf %249, %250 : vector<8x64xf32>
    %252 = arith.negf %251 : vector<8x64xf32>
    %253 = math.exp %252 : vector<8x64xf32>
    %cst_86 = arith.constant 1.000000e+00 : f32
    %254 = vector.broadcast %cst_86 : f32 to vector<8x64xf32>
    %255 = arith.addf %254, %253 : vector<8x64xf32>
    %256 = arith.divf %254, %255 : vector<8x64xf32>
    %257 = vector.extract_strided_slice %245 {offsets = [0, 128], sizes = [8, 64], strides = [1, 1]} : vector<8x384xf32> to vector<8x64xf32>
    %258 = vector.extract_strided_slice %248 {offsets = [0, 128], sizes = [8, 64], strides = [1, 1]} : vector<8x384xf32> to vector<8x64xf32>
    %259 = arith.addf %257, %258 : vector<8x64xf32>
    %260 = arith.negf %259 : vector<8x64xf32>
    %261 = math.exp %260 : vector<8x64xf32>
    %cst_87 = arith.constant 1.000000e+00 : f32
    %262 = vector.broadcast %cst_87 : f32 to vector<8x64xf32>
    %263 = arith.addf %262, %261 : vector<8x64xf32>
    %264 = arith.divf %262, %263 : vector<8x64xf32>
    %265 = vector.extract_strided_slice %245 {offsets = [0, 256], sizes = [8, 64], strides = [1, 1]} : vector<8x384xf32> to vector<8x64xf32>
    %266 = vector.extract_strided_slice %248 {offsets = [0, 256], sizes = [8, 64], strides = [1, 1]} : vector<8x384xf32> to vector<8x64xf32>
    %267 = arith.mulf %264, %266 : vector<8x64xf32>
    %268 = arith.addf %265, %267 : vector<8x64xf32>
    %269 = math.tanh %268 : vector<8x64xf32>
    %cst_88 = arith.constant 1.000000e+00 : f32
    %270 = vector.broadcast %cst_88 : f32 to vector<8x64xf32>
    %271 = arith.subf %270, %256 : vector<8x64xf32>
    %272 = arith.mulf %271, %247 : vector<8x64xf32>
    %273 = arith.mulf %256, %269 : vector<8x64xf32>
    %274 = arith.addf %272, %273 : vector<8x64xf32>
    %275 = vector.extract_strided_slice %93 {offsets = [48, 0], sizes = [8, 384], strides = [1, 1]} : vector<64x384xf32> to vector<8x384xf32>
    %276 = vector.extract_strided_slice %76 {offsets = [48, 0], sizes = [8, 64], strides = [1, 1]} : vector<64x64xf32> to vector<8x64xf32>
    %277 = arith.mulf %276, %274 : vector<8x64xf32>
    %cst_89 = arith.constant dense<0.000000e+00> : vector<8x384xf32>
    %278 = tpu.matmul %277, %2, %cst_89 {dimension_numbers = #tpu.dot_dimension_numbers<[1], [0], [0], [1], [0, 0, 1, 1], [], []>} : vector<8x64xf32>, vector<64x384xf32>, vector<8x384xf32> -> vector<8x384xf32>
    %279 = vector.extract_strided_slice %275 {offsets = [0, 0], sizes = [8, 64], strides = [1, 1]} : vector<8x384xf32> to vector<8x64xf32>
    %280 = vector.extract_strided_slice %278 {offsets = [0, 0], sizes = [8, 64], strides = [1, 1]} : vector<8x384xf32> to vector<8x64xf32>
    %281 = arith.addf %279, %280 : vector<8x64xf32>
    %282 = arith.negf %281 : vector<8x64xf32>
    %283 = math.exp %282 : vector<8x64xf32>
    %cst_90 = arith.constant 1.000000e+00 : f32
    %284 = vector.broadcast %cst_90 : f32 to vector<8x64xf32>
    %285 = arith.addf %284, %283 : vector<8x64xf32>
    %286 = arith.divf %284, %285 : vector<8x64xf32>
    %287 = vector.extract_strided_slice %275 {offsets = [0, 128], sizes = [8, 64], strides = [1, 1]} : vector<8x384xf32> to vector<8x64xf32>
    %288 = vector.extract_strided_slice %278 {offsets = [0, 128], sizes = [8, 64], strides = [1, 1]} : vector<8x384xf32> to vector<8x64xf32>
    %289 = arith.addf %287, %288 : vector<8x64xf32>
    %290 = arith.negf %289 : vector<8x64xf32>
    %291 = math.exp %290 : vector<8x64xf32>
    %cst_91 = arith.constant 1.000000e+00 : f32
    %292 = vector.broadcast %cst_91 : f32 to vector<8x64xf32>
    %293 = arith.addf %292, %291 : vector<8x64xf32>
    %294 = arith.divf %292, %293 : vector<8x64xf32>
    %295 = vector.extract_strided_slice %275 {offsets = [0, 256], sizes = [8, 64], strides = [1, 1]} : vector<8x384xf32> to vector<8x64xf32>
    %296 = vector.extract_strided_slice %278 {offsets = [0, 256], sizes = [8, 64], strides = [1, 1]} : vector<8x384xf32> to vector<8x64xf32>
    %297 = arith.mulf %294, %296 : vector<8x64xf32>
    %298 = arith.addf %295, %297 : vector<8x64xf32>
    %299 = math.tanh %298 : vector<8x64xf32>
    %cst_92 = arith.constant 1.000000e+00 : f32
    %300 = vector.broadcast %cst_92 : f32 to vector<8x64xf32>
    %301 = arith.subf %300, %286 : vector<8x64xf32>
    %302 = arith.mulf %301, %277 : vector<8x64xf32>
    %303 = arith.mulf %286, %299 : vector<8x64xf32>
    %304 = arith.addf %302, %303 : vector<8x64xf32>
    %305 = vector.extract_strided_slice %93 {offsets = [56, 0], sizes = [8, 384], strides = [1, 1]} : vector<64x384xf32> to vector<8x384xf32>
    %306 = vector.extract_strided_slice %76 {offsets = [56, 0], sizes = [8, 64], strides = [1, 1]} : vector<64x64xf32> to vector<8x64xf32>
    %307 = arith.mulf %306, %304 : vector<8x64xf32>
    %cst_93 = arith.constant dense<0.000000e+00> : vector<8x384xf32>
    %308 = tpu.matmul %307, %2, %cst_93 {dimension_numbers = #tpu.dot_dimension_numbers<[1], [0], [0], [1], [0, 0, 1, 1], [], []>} : vector<8x64xf32>, vector<64x384xf32>, vector<8x384xf32> -> vector<8x384xf32>
    %309 = vector.extract_strided_slice %305 {offsets = [0, 0], sizes = [8, 64], strides = [1, 1]} : vector<8x384xf32> to vector<8x64xf32>
    %310 = vector.extract_strided_slice %308 {offsets = [0, 0], sizes = [8, 64], strides = [1, 1]} : vector<8x384xf32> to vector<8x64xf32>
    %311 = arith.addf %309, %310 : vector<8x64xf32>
    %312 = arith.negf %311 : vector<8x64xf32>
    %313 = math.exp %312 : vector<8x64xf32>
    %cst_94 = arith.constant 1.000000e+00 : f32
    %314 = vector.broadcast %cst_94 : f32 to vector<8x64xf32>
    %315 = arith.addf %314, %313 : vector<8x64xf32>
    %316 = arith.divf %314, %315 : vector<8x64xf32>
    %317 = vector.extract_strided_slice %305 {offsets = [0, 128], sizes = [8, 64], strides = [1, 1]} : vector<8x384xf32> to vector<8x64xf32>
    %318 = vector.extract_strided_slice %308 {offsets = [0, 128], sizes = [8, 64], strides = [1, 1]} : vector<8x384xf32> to vector<8x64xf32>
    %319 = arith.addf %317, %318 : vector<8x64xf32>
    %320 = arith.negf %319 : vector<8x64xf32>
    %321 = math.exp %320 : vector<8x64xf32>
    %cst_95 = arith.constant 1.000000e+00 : f32
    %322 = vector.broadcast %cst_95 : f32 to vector<8x64xf32>
    %323 = arith.addf %322, %321 : vector<8x64xf32>
    %324 = arith.divf %322, %323 : vector<8x64xf32>
    %325 = vector.extract_strided_slice %305 {offsets = [0, 256], sizes = [8, 64], strides = [1, 1]} : vector<8x384xf32> to vector<8x64xf32>
    %326 = vector.extract_strided_slice %308 {offsets = [0, 256], sizes = [8, 64], strides = [1, 1]} : vector<8x384xf32> to vector<8x64xf32>
    %327 = arith.mulf %324, %326 : vector<8x64xf32>
    %328 = arith.addf %325, %327 : vector<8x64xf32>
    %329 = math.tanh %328 : vector<8x64xf32>
    %cst_96 = arith.constant 1.000000e+00 : f32
    %330 = vector.broadcast %cst_96 : f32 to vector<8x64xf32>
    %331 = arith.subf %330, %316 : vector<8x64xf32>
    %332 = arith.mulf %331, %307 : vector<8x64xf32>
    %333 = arith.mulf %316, %329 : vector<8x64xf32>
    %334 = arith.addf %332, %333 : vector<8x64xf32>
    %cst_97 = arith.constant dense<0.000000e+00> : vector<8x128xf32>
    %335 = tpu.matmul %35, %3, %cst_97 {dimension_numbers = #tpu.dot_dimension_numbers<[1], [0], [0], [1], [0, 0, 1, 1], [], []>} : vector<8x32xf32>, vector<32x128xf32>, vector<8x128xf32> -> vector<8x128xf32>
    %cst_98 = arith.constant dense<0.000000e+00> : vector<8x128xf32>
    %336 = tpu.matmul %334, %4, %cst_98 {dimension_numbers = #tpu.dot_dimension_numbers<[1], [0], [0], [1], [0, 0, 1, 1], [], []>} : vector<8x64xf32>, vector<64x128xf32>, vector<8x128xf32> -> vector<8x128xf32>
    %337 = arith.addf %335, %336 : vector<8x128xf32>
    %338 = vector.broadcast %24 : vector<1x128xf32> to vector<8x128xf32>
    %339 = arith.addf %337, %338 : vector<8x128xf32>
    %c0_99 = arith.constant 0 : index
    %c0_100 = arith.constant 0 : index
    %340 = vector.load %arg7[%c0_99, %c0_100] : memref<8x128xf32, #tpu.memory_space<vmem>>, vector<8x128xf32>
    tpu.vector_store %arg7[%c0_99, %c0_100], %339 {strides = array<i32>} : memref<8x128xf32, #tpu.memory_space<vmem>>, vector<8x128xf32>,
    return
  }
  func.func @transform_0(%arg0: i32) -> (i32, i32) {
    %c0_i32 = arith.constant 0 : i32
    %c0_i32_0 = arith.constant 0 : i32
    return %arg0, %c0_i32 : i32, i32
  }
  func.func @transform_1(%arg0: i32) -> (i32, i32, i32, i32) {
    %c0_i32 = arith.constant 0 : i32
    %c0_i32_0 = arith.constant 0 : i32
    %c0_i32_1 = arith.constant 0 : i32
    %c0_i32_2 = arith.constant 0 : i32
    return %c0_i32, %c0_i32_0, %arg0, %c0_i32_1 : i32, i32, i32, i32
  }
  func.func @transform_2(%arg0: i32) -> (i32, i32) {
    %c0_i32 = arith.constant 0 : i32
    %c0_i32_0 = arith.constant 0 : i32
    %c0_i32_1 = arith.constant 0 : i32
    return %c0_i32, %c0_i32_0 : i32, i32
  }
  func.func @transform_3(%arg0: i32) -> (i32, i32, i32) {
    %c0_i32 = arith.constant 0 : i32
    %c0_i32_0 = arith.constant 0 : i32
    %c0_i32_1 = arith.constant 0 : i32
    %c0_i32_2 = arith.constant 0 : i32
    return %c0_i32, %c0_i32_0, %c0_i32_1 : i32, i32, i32
  }
  func.func @transform_4(%arg0: i32) -> (i32, i32) {
    %c0_i32 = arith.constant 0 : i32
    %c0_i32_0 = arith.constant 0 : i32
    %c0_i32_1 = arith.constant 0 : i32
    return %c0_i32, %c0_i32_0 : i32, i32
  }
  func.func @transform_5(%arg0: i32) -> (i32, i32) {
    %c0_i32 = arith.constant 0 : i32
    %c0_i32_0 = arith.constant 0 : i32
    %c0_i32_1 = arith.constant 0 : i32
    return %c0_i32, %c0_i32_0 : i32, i32
  }
  func.func @transform_6(%arg0: i32) -> (i32, i32) {
    %c0_i32 = arith.constant 0 : i32
    %c0_i32_0 = arith.constant 0 : i32
    return %arg0, %c0_i32 : i32, i32
  }
}

</mosaic_0001>

<bundles_post_ra>
// kernel: tpu_custom_call.1
= control target key start
LH: loop header
LB: loop body
LE: loop exit
PB: predicated region body
PF: predicated region fallthrough
CT: control target
= control target key end

     0   :  { %11 = vsyncpa [#allocation3], 0  ;;  %s4726_s0 = inlined_call_operand.vmem [shape: f32[8,8], index: 0, kind: input, shape index: {}]   ;;  %s4727_s1 = inlined_call_operand.vmem [shape: f32[4,8,8,4], index: 1, kind: input, shape index: {}]   ;;  %s4728_s2 = inlined_call_operand.vmem [shape: f32[1,4], index: 2, kind: input, shape index: {}]   ;;  %s4729_s3 = inlined_call_operand.vmem [shape: f32[5,4,384], index: 3, kind: input, shape index: {}]   ;;  %s4730_s4 = inlined_call_operand.hbm [shape: f32[200,384], index: 4, kind: input, shape index: {}]   ;;  %s4731_s5 = inlined_call_operand.vmem [shape: f32[8,384], index: 5, kind: input, shape index: {}]   ;;  %s4732_s6 = inlined_call_operand.hbm [shape: f32[8,128], index: 6, kind: output, shape index: {}]  }
   0x1   :  { %12 = vsyncpa [#allocation4], 0  ;;  %s3967_s21 = smov [#allocation2]   ;;  %s3919_s25 = scalar_lea.hbm %s4730_s4, 9600 }
   0x2   :  { %s26_s22 = sshll.u32 %s3967_s21, 4  ;;  %p3920_p0 = scmp.ne.s32.totalorder %s4730_s4, %s3919_s25  ;;  %s27_s22 = int_to_ptr.vmem [resolvable:$true] %s26_s22 }
   0x3   :  { %p3923_p1 = scmp.lt.u32.totalorder %s3919_s25, %s4730_s4 }
   0x5   :  { %p3925_p2 = pnand %p3923_p1, %p3920_p0 }
   0x7   :  { %3928 = shalt.err (!%p3925_p2)
}
   0x8   :  { %s3929_s30 = scalar_lea.vmem %s27_s22, 9600  ;;  %p3934_p4 = scmp.lt.s32.totalorder %s27_s22, %s27_s22 }
   0x9   :  { %p3930_p3 = scmp.ne.s32.totalorder %s27_s22, %s3929_s30  ;;  %p3935_p5 = scmp.lt.s32.totalorder %s3929_s30, %s3929_s30 }
   0xb   :  { %p3936_p6 = por %p3935_p5, %p3934_p4 }
   0xd   :  { %p3937_p7 = pnand %p3936_p6, %p3930_p3 }
   0xf   :  { %3940 = shalt.err (!%p3937_p7)
}
  0x10   :  { %s3968_s7 = smov 384   ;;  %s3969_s8 = smov 24  }
  0x11   :  { %32 = dma.hbm_to_vmem [thread:$0]  %s4730_s4, 9600, %s27_s22, [#allocation3], %s3968_s7, %s3968_s7, %s3969_s8  }
  0x12   :  { %3963 = dma.done.wait [#allocation3], 9600  }
  0x13   :  { %3964 = vsyncadd [#allocation3], 4294957696  ;;  %v4735_v0 = vmov 0.0   ;;  %vm3971_vm0 = vmmov 0   ;;  %v4733_v1 = vmov 0.0|0.0   ;;  %vm99_vm1 = vcmask 64512  }
  0x14   :  { %3194 = vmatprep.subr.mxu0 %v4735_v0  ;;  %3196 = vmatprep.mubr.msk.f32.mxu0 %vm3971_vm0, %v4735_v0  ;;  %vm309_vm2 = vcmask 1043456   ;;  %v38_v2 = vld [vmem:[#allocation2] sm:$0xff]  ;;  %vm284_vm3 = vcmask 31744   ;;  %v4045_v6 = vld [vmem:[%s4727_s1 + $0x8] sm:$0xff]  ;;  %v39_v7 = vld [vmem:[#allocation2 + $0x18] sm:$0xff]  ;;  %vm174_vm4 = vcmask 261120  }
  0x15   :  { %3462 = vmatprep.subr.bf16.mxu1 %v4733_v1  ;;  %3207 = vmatprep.mubr.msk.f32.mxu1 %vm3971_vm0, %v4735_v0  ;;  %v98_v3 = vld [vmem:[%s4726_s0] sm:$0xff]  ;;  %v4050_v8 = vld [vmem:[%s4727_s1 + $0x10] sm:$0xff]  ;;  %v4059_v11 = vld [vmem:[%s4727_s1 + $0x18] sm:$0xff]  ;;  %vm1432_vm5 = vcmask 523264   ;;  %s3973_s24 = smov [#allocation5]  }
  0x16   :  { %v79_v4 = vld [vmem:[%s4729_s3] sm:$0xff]  ;;  %3195 = vmatpush3.msra.mxu0 %v38_v2  ;;  %v40_v9 = vld [vmem:[#allocation2 + $0x30] sm:$0xff]  ;;  %v4074_v13 = vld [vmem:[%s4727_s1 + $0x28] sm:$0xff]  ;;  %s2914_s25 = sshll.u32 %s3973_s24, 4  ;;  %s2915_s25 = int_to_ptr.vmem [resolvable:$true] %s2914_s25 }
  0x17   :  { %v4036_v5 = vld [vmem:[%s4727_s1] sm:$0xff]  ;;  %3197 = vmatmul.mubr.msk.f32.vlgmr.msra.gmra.mrb[0].mxu0 %vm99_vm1, %v98_v3  ;;  %3210 = vmatprep.subr.msk.mxu0 %vm309_vm2, %v79_v4  ;;  %v3463_v10 = vpack.c.bf16 %v40_v9, %v39_v7  ;;  %v4079_v14 = vld [vmem:[%s4727_s1 + $0x30] sm:$0xff]  ;;  %v4088_v15 = vld [vmem:[%s4727_s1 + $0x38] sm:$0xff]  ;;  %s3941_s26 = scalar_lea.vmem %s2915_s25, 128  ;;  %p3946_p9 = scmp.lt.s32.totalorder %s2915_s25, %s2915_s25 }
  0x18   :  { %3211 = vmatpush3.msk.msra.mxu0 %vm309_vm2, %v79_v4  ;;  %3212 = vmatprep.mubr.msk.f32.mxu0 %vm284_vm3, %v4036_v5  ;;  %v4064_v12 = vld [vmem:[%s4727_s1 + $0x20] sm:$0xff]  ;;  %v41_v16 = vld [vmem:[#allocation2 + $0x48] sm:$0xff]  ;;  %v2924_v21 = vld [vmem:[%s4729_s3 + $0x18] sm:$0xff]  ;;  %p3942_p8 = scmp.ne.s32.totalorder %s2915_s25, %s3941_s26  ;;  %p3947_p10 = scmp.lt.s32.totalorder %s3941_s26, %s3941_s26 }
  0x19   :  { %3464 = vmatpush3.bf16.msra.mxu1 %v3463_v10  ;;  %v42_v17 = vld [vmem:[#allocation2 + $0x60] sm:$0xff]  ;;  %v2923_v19 = vld [vmem:[%s4729_s3 + $0xc] sm:$0xff]  ;;  %3238 = vmatprep.subr.msk.mxu0 %vm309_vm2, %v2924_v21  ;;  %v2943_v24 = vld [vmem:[%s4727_s1 + $0x98] sm:$0xff] }
  0x1a   :  { %3465 = vmatprep.subr.bf16.mxu1 %v4733_v1  ;;  %v3466_v18 = vpack.c.bf16 %v42_v17, %v41_v16  ;;  %v2940_v20 = vld [vmem:[%s4727_s1 + $0x80] sm:$0xff]  ;;  %v2941_v22 = vld [vmem:[%s4727_s1 + $0x88] sm:$0xff]  ;;  %v2942_v23 = vld [vmem:[%s4727_s1 + $0x90] sm:$0xff]  ;;  %p3948_p11 = por %p3947_p10, %p3946_p9 }
  0x1b   :  { %3213 = vmatmul.mubr.msk.f32.vlgmr.msra.gmra.mrb[2].mxu0 %vm284_vm3, %v4045_v6  ;;  %v2944_v25 = vld [vmem:[%s4727_s1 + $0xa0] sm:$0xff]  ;;  %v2945_v26 = vld [vmem:[%s4727_s1 + $0xa8] sm:$0xff]  ;;  %v2946_v27 = vld [vmem:[%s4727_s1 + $0xb0] sm:$0xff] }
  0x1c   :  { %3215 = vmatprep.mubr.msk.f32.mxu0 %vm284_vm3, %v4050_v8  ;;  %3239 = vmatpush3.msk.msra.mxu0 %vm309_vm2, %v2924_v21  ;;  %v2947_v28 = vld [vmem:[%s4727_s1 + $0xb8] sm:$0xff]  ;;  %v90_v29 = vld [vmem:[%s4731_s5] ss:$0 sm:$0xff]  ;;  %v92_v34 = vld [vmem:[%s4731_s5 + $0x2] ss:$0 sm:$0xff]  ;;  %p3949_p12 = pnand %p3948_p11, %p3942_p8 }
  0x1d   :  { %3467 = vmatpush3.bf16.msra.mxu1 %v3466_v18  ;;  %v2927_v59 = vld [vmem:[%s4729_s3 + $0x30] sm:$0xff]  ;;  %v4181_v61 = vld [vmem:[%s4727_s1 + $0x40] sm:$0xff]  ;;  %v4194_v63 = vld [vmem:[%s4727_s1 + $0x48] sm:$0xff] }
  0x1e   :  { %3224 = vmatprep.subr.msk.mxu1 %vm309_vm2, %v2923_v19  ;;  %v891_v60 = vcombine.high %v2927_v59, %v2927_v59  ;;  %v2925_v62 = vld [vmem:[%s4729_s3 + $0x24] sm:$0xff]  ;;  %v4204_v3 = vld [vmem:[%s4727_s1 + $0x50] sm:$0xff]  ;;  %v4212_v4 = vld [vmem:[%s4727_s1 + $0x58] sm:$0xff] }
  0x1f   :  { %3216 = vmatmul.mubr.msk.f32.gmra.mrb[4].mxu0 %vm284_vm3, %v4059_v11  ;;  %v1142_v2 = vcombine.high %v2925_v62, %v2925_v62 }
  0x20   :  { %3218 = vmatprep.mubr.msk.f32.mxu0 %vm284_vm3, %v4064_v12 }
  0x23   :  { %3219 = vmatmul.mubr.msk.f32.gmra.mrb[6].mxu0 %vm284_vm3, %v4074_v13 }
  0x24   :  { %3221 = vmatprep.mubr.msk.f32.mxu0 %vm284_vm3, %v4079_v14 }
  0x27   :  { %3222 = vmatmul.mubr.msk.f32.gmra.mrb[8].mxu0 %vm284_vm3, %v4088_v15 }
  0x28   :  { %3240 = vmatprep.mubr.msk.f32.mxu0 %vm284_vm3, %v2940_v20 }
  0x2b   :  { %3241 = vmatmul.mubr.msk.f32.vlgmr.msra.gmra.mrb[10].mxu0 %vm284_vm3, %v2941_v22 }
  0x2c   :  { %3243 = vmatprep.mubr.msk.f32.mxu0 %vm284_vm3, %v2942_v23 }
  0x2f   :  { %3244 = vmatmul.mubr.msk.f32.gmra.mrb[12].mxu0 %vm284_vm3, %v2943_v24 }
  0x30   :  { %3246 = vmatprep.mubr.msk.f32.mxu0 %vm284_vm3, %v2944_v25 }
  0x33   :  { %3247 = vmatmul.mubr.msk.f32.gmra.mrb[14].mxu0 %vm284_vm3, %v2945_v26 }
  0x34   :  { %3249 = vmatprep.mubr.msk.f32.mxu0 %vm284_vm3, %v2946_v27 }
  0x37   :  { %3250 = vmatmul.mubr.msk.f32.gmra.mrb[16].mxu0 %vm284_vm3, %v2947_v28 }
  0x38   :  { %3254 = vmatprep.mubr.msk.f32.mxu0 %vm284_vm3, %v4181_v61 }
  0xea   :  { %v169_v30 = vpop.f32.mrb[0].mxu0 }
  0xeb   :  { %v170_v31 = vadd.f32 %v169_v30, %v90_v29  ;;  %v3198_v32 = vpop.f32.mrb[1].mxu0 }
  0xed   :  { %v173_v33 = vmax.f32 %v170_v31, 0.0 }
  0xee   :  { %v3214_v35 = vpop.f32.mrb[2].mxu0 }
  0xef   :  { %3208 = vmatmul.mubr.msk.f32.vlgmr.msra.gmra.mrb[0].mxu1 %vm174_vm4, %v173_v33  ;;  %v379_v36 = vpop.f32.mrb[3].mxu0  ;;  %v4144_v38 = vadd.f32 %v3214_v35, %v92_v34 }
  0xf0   :  { %v4140_v37 = vadd.f32 %v379_v36, %v92_v34  ;;  %3225 = vmatpush3.msk.msra.mxu1 %vm309_vm2, %v2923_v19  ;;  %3226 = vmatprep.mubr.msk.f32.mxu1 %vm284_vm3, %v2940_v20 }
  0xf1   :  { %v421_v46 = vsel %vm284_vm3, %v4144_v38, -inf  ;;  %2984 = vmatprep.subr.msk.mxu1 %vm309_vm2, %v891_v60  ;;  %v47_v60 = vld [vmem:[#allocation2 + $0x98] sm:$0xff] }
  0xf2   :  { %v3217_v39 = vpop.f32.mrb[4].mxu0  ;;  %v418_v40 = vsel %vm284_vm3, %v4140_v37, -inf }
  0xf3   :  { %v389_v41 = vpop.f32.mrb[5].mxu0  ;;  %419 = vmax.xlane.f32.xlu0 %v418_v40  ;;  %3227 = vmatmul.mubr.msk.f32.vlgmr.msra.gmra.mrb[2].mxu1 %vm284_vm3, %v2941_v22  ;;  %v4149_v42 = vadd.f32 %v3217_v39, %v92_v34 }
  0xf4   :  { %v390_v43 = vadd.f32 %v389_v41, %v92_v34  ;;  %3229 = vmatprep.mubr.msk.f32.mxu1 %vm284_vm3, %v2942_v23  ;;  %2985 = vmatpush1.msk.msra.mxu1 %vm309_vm2, %v2927_v59  ;;  %v44_v59 = vld [vmem:[#allocation2 + $0x80] sm:$0xff] }
  0xf5   :  { %v427_v50 = vsel %vm284_vm3, %v4149_v42, -inf  ;;  %3003 = vmatprep.subr.msk.mxu1 %vm309_vm2, %v1142_v2  ;;  %v4311_v2 = vpack.c.bf16 %v47_v60, %v44_v59 }
  0xf6   :  { %v3220_v44 = vpop.f32.mrb[6].mxu0  ;;  %v424_v45 = vsel %vm284_vm3, %v390_v43, -inf }
  0xf7   :  { %v399_v47 = vpop.f32.mrb[7].mxu0  ;;  %425 = vmax.xlane.f32.xlu1 %v424_v45  ;;  %422 = vmax.xlane.f32.xlu0 %v421_v46  ;;  %v4155_v48 = vadd.f32 %v3220_v44, %v92_v34 }
  0xf8   :  { %v400_v49 = vadd.f32 %v399_v47, %v92_v34  ;;  %3230 = vmatmul.mubr.msk.f32.gmra.mrb[4].mxu1 %vm284_vm3, %v2943_v24 }
  0xf9   :  { %3232 = vmatprep.mubr.msk.f32.mxu1 %vm284_vm3, %v2944_v25  ;;  %v433_v56 = vsel %vm284_vm3, %v4155_v48, -inf }
  0xfa   :  { %v3223_v51 = vpop.f32.mrb[8].mxu0  ;;  %v430_v52 = vsel %vm284_vm3, %v400_v49, -inf }
  0xfb   :  { %v409_v53 = vpop.f32.mrb[9].mxu0  ;;  %428 = vmax.xlane.f32.xlu1 %v427_v50  ;;  %431 = vmax.xlane.f32.xlu0 %v430_v52  ;;  %v4162_v54 = vadd.f32 %v3223_v51, %v92_v34 }
  0xfc   :  { %v410_v55 = vadd.f32 %v409_v53, %v92_v34  ;;  %3233 = vmatmul.mubr.msk.f32.gmra.mrb[6].mxu1 %vm284_vm3, %v2945_v26  ;;  %v4257_v53 = vld [vmem:[%s4727_s1 + $0x60] sm:$0xff] }
  0xfd   :  { %3235 = vmatprep.mubr.msk.f32.mxu1 %vm284_vm3, %v2946_v27  ;;  %v439_v58 = vsel %vm284_vm3, %v4162_v54, -inf }
  0xfe   :  { %v436_v57 = vsel %vm284_vm3, %v410_v55, -inf }
  0xff   :  { %434 = vmax.xlane.f32.xlu1 %v433_v56  ;;  %437 = vmax.xlane.f32.xlu0 %v436_v57  ;;  %v4284_v56 = vld [vmem:[%s4727_s1 + $0x70] sm:$0xff]  ;;  %v4296_v57 = vld [vmem:[%s4727_s1 + $0x78] sm:$0xff] }
 0x100   :  { %3236 = vmatmul.mubr.msk.f32.gmra.mrb[8].mxu1 %vm284_vm3, %v2947_v28 }
 0x101   :  { %986 = vmatprep.mubr.f32.mxu1 %v4735_v0 }
 0x103   :  { %440 = vmax.xlane.f32.xlu1 %v439_v58  ;;  %v2926_v58 = vld [vmem:[%s4729_s3 + $0x2c] sm:$0xf] }
 0x104   :  { %2986 = vmatmul.mubr.msk.f32.vlgmr.msra.gmra.mrb[10].mxu1 %vm284_vm3, %v4181_v61 }
 0x105   :  { %992 = vmatprep.mubr.f32.mxu1 %v4735_v0  ;;  %3004 = vmatpush1.msk.msra.mxu1 %vm309_vm2, %v2925_v62  ;;  %v3242_v62 = vpop.f32.mrb[10].mxu0 }
 0x106   :  { %3469 = vmatprep.subr.bf16.mxu1 %v4311_v2 }
 0x108   :  { %2987 = vmatmul.mubr.msk.f32.gmra.mrb[12].mxu1 %vm284_vm3, %v4194_v63 }
 0x109   :  { %998 = vmatprep.mubr.f32.mxu1 %v4735_v0 }
 0x10c   :  { %2988 = vmatmul.mubr.msk.f32.gmra.mrb[14].mxu1 %vm284_vm3, %v4204_v3 }
 0x10d   :  { %1004 = vmatprep.mubr.f32.mxu1 %v4735_v0 }
 0x110   :  { %2989 = vmatmul.mubr.msk.f32.gmra.mrb[16].mxu1 %vm284_vm3, %v4212_v4 }
 0x111   :  { %1010 = vmatprep.mubr.f32.mxu1 %v4735_v0 }
 0x114   :  { %2990 = vmatmul.mubr.msk.f32.gmra.mrb[18].mxu1 %vm284_vm3, %v4257_v53 }
 0x115   :  { %1016 = vmatprep.mubr.f32.mxu1 %v4735_v0 }
 0x180   :  { %v420_v7 = vpop.xlane.xlu0 %419 }
 0x181   :  { %v442_v9 = vsub.f32 %v4140_v37, %v420_v7  ;;  %v4316_v7 = vld [vmem:[%s4731_s5 + $0x4] ss:$0 sm:$0xff] }
 0x183   :  { %v450_v10 = vmul.f32 1.442695, %v442_v9  ;;  %v4318_v9 = vpop.f32.mrb[11].mxu0 }
 0x184   :  { %v426_v16 = vpop.xlane.xlu1 %425  ;;  %v423_v17 = vpop.xlane.xlu0 %422 }
 0x185   :  { %3775 = vpow2.f32 %v450_v10  ;;  %v444_v18 = vsub.f32 %v390_v43, %v426_v16  ;;  %v443_v19 = vsub.f32 %v4144_v38, %v423_v17  ;;  %v4321_v10 = vadd.f32 %v3242_v62, %v4316_v7 }
 0x187   :  { %v454_v20 = vmul.f32 1.442695, %v444_v18  ;;  %v452_v21 = vmul.f32 1.442695, %v443_v19 }
 0x188   :  { %v429_v22 = vpop.xlane.xlu1 %428  ;;  %v432_v23 = vpop.xlane.xlu0 %431 }
 0x189   :  { %3777 = vpow2.f32 %v454_v20  ;;  %v445_v24 = vsub.f32 %v4149_v42, %v429_v22  ;;  %v446_v25 = vsub.f32 %v400_v49, %v432_v23 }
 0x18a   :  { %3779 = vpow2.f32 %v452_v21 }
 0x18b   :  { %v456_v26 = vmul.f32 1.442695, %v445_v24  ;;  %v458_v27 = vmul.f32 1.442695, %v446_v25  ;;  %v3245_v25 = vpop.f32.mrb[12].mxu0 }
 0x18c   :  { %v435_v28 = vpop.xlane.xlu1 %434  ;;  %v438_v29 = vpop.xlane.xlu0 %437 }
 0x18d   :  { %3781 = vpow2.f32 %v456_v26  ;;  %v447_v30 = vsub.f32 %v4155_v48, %v435_v28  ;;  %v448_v31 = vsub.f32 %v410_v55, %v438_v29  ;;  %v4272_v55 = vld [vmem:[%s4727_s1 + $0x68] sm:$0xff]  ;;  %v757_v28 = vpop.f32.mrb[13].mxu0 }
 0x18e   :  { %3783 = vpow2.f32 %v458_v27  ;;  %2991 = vmatmul.mubr.msk.f32.gmra.mrb[20].mxu1 %vm284_vm3, %v4272_v55  ;;  %v4327_v27 = vadd.f32 %v3245_v25, %v4316_v7  ;;  %v4330_v29 = vadd.f32 %v757_v28, %v4316_v7 }
 0x18f   :  { %v4221_v32 = vpop.eup %3775  ;;  %v460_v33 = vmul.f32 1.442695, %v447_v30  ;;  %v462_v34 = vmul.f32 1.442695, %v448_v31  ;;  %1022 = vmatprep.mubr.f32.mxu1 %v4735_v0  ;;  %v3248_v30 = vpop.f32.mrb[14].mxu0 }
 0x190   :  { %v441_v35 = vpop.xlane.xlu1 %440  ;;  %v466_v36 = vsel %vm284_vm3, %v4221_v32, 0.0  ;;  %4738 = vst [vmem:[#allocation9_spill] sm:$0xff] %v4327_v27  ;;  %4739 = vst [vmem:[#allocation10_spill] sm:$0xff] %v4330_v29  ;;  %v4333_v31 = vadd.f32 %v3248_v30, %v4316_v7 }
 0x191   :  { %3785 = vpow2.f32 %v460_v33  ;;  %v449_v37 = vsub.f32 %v4162_v54, %v441_v35  ;;  %467 = vadd.xlane.f32.xlu0 %v466_v36  ;;  %v2928_v54 = vld [vmem:[%s4729_s3 + $0x38] sm:$0xf]  ;;  %v767_v33 = vpop.f32.mrb[15].mxu0 }
 0x192   :  { %3787 = vpow2.f32 %v462_v34  ;;  %3252 = vmatprep.subr.msk.mxu0 %vm309_vm2, %v2928_v54  ;;  %2992 = vmatmul.mubr.msk.f32.gmra.mrb[22].mxu1 %vm284_vm3, %v4284_v56  ;;  %4740 = vst [vmem:[#allocation11_spill] sm:$0xff] %v4333_v31  ;;  %v4336_v34 = vadd.f32 %v767_v33, %v4316_v7  ;;  %v3251_v35 = vpop.f32.mrb[16].mxu0 }
 0x193   :  { %v4226_v38 = vpop.eup %3777  ;;  %v464_v39 = vmul.f32 1.442695, %v449_v37  ;;  %3253 = vmatpush3.msk.msra.mxu0 %vm309_vm2, %v2928_v54  ;;  %1028 = vmatprep.mubr.f32.mxu1 %v4735_v0  ;;  %v777_v36 = vpop.f32.mrb[17].mxu0  ;;  %v4339_v37 = vadd.f32 %v3251_v35, %v4316_v7 }
 0x194   :  { %v4228_v40 = vpop.eup %3779  ;;  %v472_v41 = vsel %vm284_vm3, %v4226_v38, 0.0  ;;  %3255 = vmatmul.mubr.msk.f32.vlgmr.msra.gmra.mrb[18].mxu0 %vm284_vm3, %v4194_v63  ;;  %3266 = vmatprep.subr.msk.mxu0 %vm309_vm2, %v2926_v58  ;;  %4741 = vst [vmem:[#allocation12_spill] sm:$0xff] %v4336_v34 }
 0x195   :  { %3789 = vpow2.f32 %v464_v39  ;;  %473 = vadd.xlane.f32.xlu0 %v472_v41  ;;  %v469_v42 = vsel %vm284_vm3, %v4228_v40, 0.0  ;;  %3257 = vmatprep.mubr.msk.f32.mxu0 %vm284_vm3, %v4204_v3  ;;  %4742 = vst [vmem:[#allocation13_spill] sm:$0xff] %v4339_v37  ;;  %v4342_v39 = vadd.f32 %v777_v36, %v4316_v7  ;;  %v93_v41 = vld [vmem:[%s4731_s5 + $0x3] ss:$0 sm:$0xff]  ;;  %v59_v37 = vld [vmem:[#allocation2 + $0xf8] sm:$0xff] }
 0x196   :  { %470 = vadd.xlane.f32.xlu1 %v469_v42  ;;  %2993 = vmatmul.mubr.msk.f32.gmra.mrb[24].mxu1 %vm284_vm3, %v4296_v57 }
 0x197   :  { %v4234_v43 = vpop.eup %3781  ;;  %1237 = vmatprep.mubr.f32.mxu1 %v4735_v0  ;;  %3267 = vmatpush3.msk.msra.mxu0 %vm309_vm2, %v2926_v58  ;;  %4743 = vst [vmem:[#allocation14_spill] sm:$0xff] %v4342_v39  ;;  %v55_v39 = vld [vmem:[#allocation2 + $0xd8] sm:$0xff] }
 0x198   :  { %v4236_v44 = vpop.eup %3783  ;;  %v475_v45 = vsel %vm284_vm3, %v4234_v43, 0.0  ;;  %3258 = vmatmul.mubr.msk.f32.gmra.mrb[20].mxu0 %vm284_vm3, %v4212_v4  ;;  %3484 = vmatprep.subr.bf16.mxu0 %v4733_v1 }
 0x199   :  { %v478_v46 = vsel %vm284_vm3, %v4236_v44, 0.0  ;;  %3260 = vmatprep.mubr.msk.f32.mxu0 %vm284_vm3, %v4257_v53 }
 0x19a   :  { %476 = vadd.xlane.f32.xlu1 %v475_v45  ;;  %479 = vadd.xlane.f32.xlu0 %v478_v46 }
 0x19b   :  { %v4242_v47 = vpop.eup %3785 }
 0x19c   :  { %v4244_v48 = vpop.eup %3787  ;;  %v481_v49 = vsel %vm284_vm3, %v4242_v47, 0.0  ;;  %3261 = vmatmul.mubr.msk.f32.gmra.mrb[22].mxu0 %vm284_vm3, %v4272_v55 }
 0x19d   :  { %v484_v50 = vsel %vm284_vm3, %v4244_v48, 0.0  ;;  %3263 = vmatprep.mubr.msk.f32.mxu0 %vm284_vm3, %v4284_v56 }
 0x19e   :  { %482 = vadd.xlane.f32.xlu1 %v481_v49  ;;  %485 = vadd.xlane.f32.xlu0 %v484_v50 }
 0x19f   :  { %v4250_v51 = vpop.eup %3789 }
 0x1a0   :  { %v487_v52 = vsel %vm284_vm3, %v4250_v51, 0.0  ;;  %3264 = vmatmul.mubr.msk.f32.gmra.mrb[24].mxu0 %vm284_vm3, %v4296_v57 }
 0x1a2   :  { %488 = vadd.xlane.f32.xlu1 %v487_v52 }
 0x1c2   :  { %v4324_v16 = vpop.f32.mrb[0].mxu1 }
 0x1c3   :  { %4737 = vst [vmem:[#allocation8_spill] sm:$0xff] %v4324_v16  ;;  %v3209_v17 = vpop.f32.mrb[1].mxu1 }
 0x1c6   :  { %v3228_v18 = vpop.f32.mrb[2].mxu1 }
 0x1c7   :  { %v607_v19 = vpop.f32.mrb[3].mxu1  ;;  %v613_v45 = vadd.f32 %v3228_v18, %v93_v41 }
 0x1c8   :  { %v608_v42 = vadd.f32 %v607_v19, %v93_v41 }
 0x1c9   :  { %v647_v50 = vmax.f32 %v613_v45, 0.0 }
 0x1ca   :  { %v646_v49 = vmax.f32 %v608_v42, 0.0 }
 0x1cb   :  { %v3231_v20 = vpop.f32.mrb[4].mxu1  ;;  %v655_v60 = vsub.f32 0.0, %v647_v50 }
 0x1cc   :  { %v617_v21 = vpop.f32.mrb[5].mxu1  ;;  %v654_v58 = vsub.f32 0.0, %v646_v49  ;;  %v623_v59 = vadd.f32 %v3231_v20, %v93_v41 }
 0x1cd   :  { %v618_v46 = vadd.f32 %v617_v21, %v93_v41  ;;  %v664_v35 = vmul.f32 1.442695, %v655_v60  ;;  %v4355_v60 = vld [vmem:[%s4728_s2] ss:$0 sm:$0xff] }
 0x1ce   :  { %v662_v28 = vmul.f32 1.442695, %v654_v58  ;;  %v649_v30 = vmax.f32 %v623_v59, 0.0  ;;  %v2948_v59 = vld [vmem:[%s4727_s1 + $0xc0] sm:$0xff] }
 0x1cf   :  { %v3234_v22 = vpop.f32.mrb[6].mxu1  ;;  %v648_v52 = vmax.f32 %v618_v46, 0.0 }
 0x1d0   :  { %v627_v23 = vpop.f32.mrb[7].mxu1  ;;  %v633_v62 = vadd.f32 %v3234_v22, %v93_v41  ;;  %3791 = vpow2.f32 %v662_v28  ;;  %v657_v18 = vsub.f32 0.0, %v649_v30  ;;  %v43_v28 = vld [vmem:[#allocation2 + $0x78] sm:$0xff]  ;;  %v46_v30 = vld [vmem:[#allocation2 + $0x90] sm:$0xff] }
 0x1d1   :  { %v628_v54 = vadd.f32 %v627_v23, %v93_v41  ;;  %v656_v17 = vsub.f32 0.0, %v648_v52  ;;  %3793 = vpow2.f32 %v664_v35  ;;  %v56_v35 = vld [vmem:[#allocation2 + $0xe0] sm:$0xff] }
 0x1d2   :  { %v651_v36 = vmax.f32 %v633_v62, 0.0  ;;  %v668_v45 = vmul.f32 1.442695, %v657_v18 }
 0x1d3   :  { %v3237_v24 = vpop.f32.mrb[8].mxu1  ;;  %v650_v25 = vmax.f32 %v628_v54, 0.0  ;;  %v666_v0 = vmul.f32 1.442695, %v656_v17 }
 0x1d4   :  { %v637_v26 = vpop.f32.mrb[9].mxu1  ;;  %v643_v1 = vadd.f32 %v3237_v24, %v93_v41  ;;  %v659_v42 = vsub.f32 0.0, %v651_v36  ;;  %v2950_v36 = vld [vmem:[%s4727_s1 + $0xd0] sm:$0xff] }
 0x1d5   :  { %v638_v33 = vadd.f32 %v637_v26, %v93_v41  ;;  %v658_v19 = vsub.f32 0.0, %v650_v25  ;;  %3795 = vpow2.f32 %v666_v0  ;;  %v748_v0 = vadd.f32 %v4318_v9, %v4316_v7  ;;  %v2949_v7 = vld [vmem:[%s4727_s1 + $0xc8] sm:$0xff] }
 0x1d6   :  { %v653_v23 = vmax.f32 %v643_v1, 0.0  ;;  %v672_v46 = vmul.f32 1.442695, %v659_v42  ;;  %v827_v9 = vsub.f32 1.0, %v4181_v61 }
 0x1d7   :  { %v652_v21 = vmax.f32 %v638_v33, 0.0  ;;  %v670_v20 = vmul.f32 1.442695, %v658_v19  ;;  %v50_v19 = vld [vmem:[#allocation2 + $0xb0] sm:$0xff] }
 0x1d8   :  { %v661_v49 = vsub.f32 0.0, %v653_v23 }
 0x1d9   :  { %v660_v22 = vsub.f32 0.0, %v652_v21  ;;  %3797 = vpow2.f32 %v670_v20  ;;  %v53_v20 = vld [vmem:[#allocation2 + $0xc8] sm:$0xff] }
 0x1da   :  { %3799 = vpow2.f32 %v668_v45  ;;  %v676_v24 = vmul.f32 1.442695, %v661_v49  ;;  %v3792_v41 = vpop.eup %3791  ;;  %v786_v45 = vmax.f32 %v748_v0, 0.0  ;;  %v4374_v34 = vpack.c.bf16 %v53_v20, %v50_v19 }
 0x1db   :  { %v674_v26 = vmul.f32 1.442695, %v660_v22  ;;  %3801 = vpow2.f32 %v672_v46  ;;  %v3794_v52 = vpop.eup %3793  ;;  %v843_v58 = vsub.f32 1.0, %v3792_v41  ;;  %v835_v21 = vmul.f32 %v3792_v41, %v2948_v59  ;;  %v49_v22 = vld [vmem:[#allocation2 + $0xa8] sm:$0xff]  ;;  %v52_v46 = vld [vmem:[#allocation2 + $0xc0] sm:$0xff] }
 0x1dc   :  { %v844_v17 = vsub.f32 1.0, %v3794_v52  ;;  %v836_v33 = vmul.f32 %v3794_v52, %v2949_v7  ;;  %v45_v41 = vld [vmem:[#allocation2 + $0x88] sm:$0xff]  ;;  %v48_v59 = vld [vmem:[#allocation2 + $0xa0] sm:$0xff] }
 0x1dd   :  { %v857_v42 = vmul.f32 %v4355_v60, %v843_v58  ;;  %v4385_v7 = vpack.c.bf16 %v48_v59, %v45_v41 }
 0x1de   :  { %v858_v23 = vmul.f32 %v4355_v60, %v844_v17  ;;  %v2951_v17 = vld [vmem:[%s4727_s1 + $0xd8] sm:$0xff] }
 0x1df   :  { %v3796_v54 = vpop.eup %3795  ;;  %v865_v52 = vadd.f32 %v857_v42, %v835_v21 }
 0x1e0   :  { %v845_v25 = vsub.f32 1.0, %v3796_v54  ;;  %v837_v0 = vmul.f32 %v3796_v54, %v2950_v36  ;;  %v794_v54 = vsub.f32 0.0, %v786_v45  ;;  %v866_v42 = vadd.f32 %v858_v23, %v836_v33 }
 0x1e2   :  { %v859_v16 = vmul.f32 %v4355_v60, %v845_v25  ;;  %v2952_v25 = vld [vmem:[%s4727_s1 + $0xe0] sm:$0xff] }
 0x1e3   :  { %v3798_v18 = vpop.eup %3797 }
 0x1e4   :  { %v3800_v49 = vpop.eup %3799  ;;  %v867_v45 = vadd.f32 %v859_v16, %v837_v0  ;;  %v839_v27 = vmul.f32 %v3798_v18, %v2952_v25  ;;  %v51_v25 = vld [vmem:[#allocation2 + $0xb8] sm:$0xff] }
 0x1e5   :  { %v3802_v58 = vpop.eup %3801  ;;  %v838_v59 = vmul.f32 %v3800_v49, %v2951_v17 }
 0x1e6   :  { %v848_v19 = vsub.f32 1.0, %v3802_v58 }
 0x21e   :  { %v468_v50 = vpop.xlane.xlu0 %467 }
 0x21f   :  { %3803 = vrcp.f32 %v468_v50  ;;  %v847_v50 = vsub.f32 1.0, %v3798_v18  ;;  %v2954_v18 = vld [vmem:[%s4727_s1 + $0xf0] sm:$0xff] }
 0x220   :  { %3805 = vpow2.f32 %v674_v26  ;;  %v58_v26 = vld [vmem:[#allocation2 + $0xf0] sm:$0xff] }
 0x221   :  { %3807 = vpow2.f32 %v676_v24  ;;  %v4389_v21 = vpack.c.bf16 %v58_v26, %v55_v39  ;;  %v861_v29 = vmul.f32 %v4355_v60, %v847_v50 }
 0x222   :  { %v474_v1 = vpop.xlane.xlu0 %473 }
 0x223   :  { %v471_v62 = vpop.xlane.xlu1 %470  ;;  %3809 = vrcp.f32 %v474_v1 }
 0x224   :  { %3811 = vrcp.f32 %v471_v62  ;;  %v4370_v62 = vpack.c.bf16 %v46_v30, %v43_v28  ;;  %v4376_v28 = vpack.c.bf16 %v52_v46, %v49_v22  ;;  %v4387_v46 = vpack.c.bf16 %v59_v37, %v56_v35 }
 0x225   :  { %v873_v35 = vmul.f32 %v865_v52, %v827_v9  ;;  %v4745_v52 = vsub.f32 1.0, %v4194_v63 }
 0x227   :  { %v477_v24 = vpop.xlane.xlu1 %476  ;;  %v480_v1 = vpop.xlane.xlu0 %479  ;;  %v874_v17 = vmul.f32 %v866_v42, %v4745_v52  ;;  %v61_v52 = vld [vmem:[#allocation2 + $0x108] sm:$0xff] }
 0x228   :  { %3813 = vrcp.f32 %v477_v24  ;;  %v846_v24 = vsub.f32 1.0, %v3800_v49 }
 0x229   :  { %v3804_v31 = vpop.eup %3803  ;;  %3815 = vrcp.f32 %v480_v1  ;;  %v2953_v1 = vld [vmem:[%s4727_s1 + $0xe8] sm:$0xff] }
 0x22a   :  { %v491_v30 = vmul.f32 %v3804_v31, %v4221_v32  ;;  %v3806_v36 = vpop.eup %3805  ;;  %v860_v23 = vmul.f32 %v4355_v60, %v846_v24  ;;  %v840_v0 = vmul.f32 %v3802_v58, %v2953_v1  ;;  %v869_v58 = vadd.f32 %v861_v29, %v839_v27  ;;  %v54_v24 = vld [vmem:[#allocation2 + $0xd0] sm:$0xff] }
 0x22b   :  { %v483_v20 = vpop.xlane.xlu1 %482  ;;  %v486_v22 = vpop.xlane.xlu0 %485  ;;  %v849_v26 = vsub.f32 1.0, %v3806_v36  ;;  %v4746_v29 = vmov 0.0  }
 0x22c   :  { %v3808_v32 = vpop.eup %3807  ;;  %v506_v31 = vmul.f32 %v491_v30, %v4036_v5  ;;  %3817 = vrcp.f32 %v483_v20  ;;  %v862_v30 = vmul.f32 %v4355_v60, %v848_v19  ;;  %v833_v20 = vsub.f32 1.0, %v4284_v56 }
 0x22d   :  { %v3810_v41 = vpop.eup %3809  ;;  %3819 = vrcp.f32 %v486_v22  ;;  %v841_v22 = vmul.f32 %v3806_v36, %v2954_v18  ;;  %v868_v1 = vadd.f32 %v860_v23, %v838_v59 }
 0x22e   :  { %v3812_v37 = vpop.eup %3811  ;;  %v819_v39 = vmul.f32 %v4181_v61, %v506_v31  ;;  %v495_v5 = vmul.f32 %v3810_v41, %v4226_v38  ;;  %v4744_v61 = vsub.f32 1.0, %v4204_v3  ;;  %v850_v38 = vsub.f32 1.0, %v3808_v32 }
 0x22f   :  { %v493_v33 = vmul.f32 %v3812_v37, %v4228_v40  ;;  %v489_v16 = vpop.xlane.xlu1 %488  ;;  %v863_v31 = vmul.f32 %v4355_v60, %v849_v26  ;;  %v802_v41 = vmul.f32 1.442695, %v794_v54  ;;  %v62_v37 = vld [vmem:[#allocation2 + $0x110] sm:$0xff]  ;;  %v4424_v26 = vpack.c.bf16 %v54_v24, %v51_v25 }
 0x230   :  { %3821 = vrcp.f32 %v489_v16  ;;  %v881_v49 = vadd.f32 %v873_v35, %v819_v39  ;;  %v508_v9 = vmul.f32 %v495_v5, %v4050_v8  ;;  %v875_v50 = vmul.f32 %v867_v45, %v4744_v61  ;;  %v57_v61 = vld [vmem:[#allocation2 + $0xe8] sm:$0xff] }
 0x231   :  { %v507_v40 = vmul.f32 %v493_v33, %v4045_v6  ;;  %v2955_v6 = vld [vmem:[%s4727_s1 + $0xf8] sm:$0xff]  ;;  %v870_v39 = vadd.f32 %v862_v30, %v840_v0  ;;  %v864_v16 = vmul.f32 %v4355_v60, %v850_v38  ;;  %v4747_v54 = vsub.f32 1.0, %v4257_v53 }
 0x232   :  { %v3814_v19 = vpop.eup %3813  ;;  %3005 = vmatmul.mubr.msk.f32.vlgmr.msra.gmra.mrb[10].mxu1 %vm284_vm3, %v881_v49  ;;  %3268 = vmatprep.mubr.msk.f32.mxu0 %vm284_vm3, %v881_v49  ;;  %v821_v8 = vmul.f32 %v4204_v3, %v508_v9  ;;  %v65_v3 = vld [vmem:[#allocation2 + $0x128] sm:$0xff]  ;;  %v842_v33 = vmul.f32 %v3808_v32, %v2955_v6  ;;  %v871_v23 = vadd.f32 %v863_v31, %v841_v22  ;;  %v4748_v60 = vsub.f32 1.0, %v4212_v4 }
 0x233   :  { %v3816_v42 = vpop.eup %3815  ;;  %v497_v27 = vmul.f32 %v3814_v19, %v4234_v43  ;;  %3471 = vmatpush1.bf16.msra.mxu1 %v4370_v62  ;;  %1243 = vmatprep.mubr.f32.mxu1 %v4746_v29  ;;  %v820_v45 = vmul.f32 %v4194_v63, %v507_v40  ;;  %v877_v59 = vmul.f32 %v869_v58, %v4747_v54  ;;  %3823 = vpow2.f32 %v802_v41 }
 0x234   :  { %v499_v36 = vmul.f32 %v3816_v42, %v4236_v44  ;;  %v883_v35 = vadd.f32 %v875_v50, %v821_v8  ;;  %3473 = vmatprep.subr.bf16.mxu1 %v4374_v34  ;;  %v4431_v44 = vpack.c.bf16 %v65_v3, %v62_v37  ;;  %v876_v32 = vmul.f32 %v868_v1, %v4748_v60 }
 0x235   :  { %v882_v5 = vadd.f32 %v874_v17, %v820_v45  ;;  %v509_v43 = vmul.f32 %v497_v27, %v4059_v11  ;;  %v834_v50 = vsub.f32 1.0, %v4296_v57  ;;  %v872_v40 = vadd.f32 %v864_v16, %v842_v33  ;;  %v64_v17 = vld [vmem:[#allocation2 + $0x120] sm:$0xff]  ;;  %v66_v27 = vld [vmem:[#allocation2 + $0x130] sm:$0xff] }
 0x236   :  { %v3818_v18 = vpop.eup %3817  ;;  %v510_v63 = vmul.f32 %v499_v36, %v4064_v12  ;;  %v879_v24 = vmul.f32 %v871_v23, %v833_v20  ;;  %v4750_v19 = vmov 0.0|0.0   ;;  %v4461_v20 = vpack.c.bf16 %v64_v17, %v61_v52  ;;  %v2929_v36 = vld [vmem:[%s4731_s5 + $0x5] ss:$8 sm:$0x7] }
 0x237   :  { %v3820_v49 = vpop.eup %3819  ;;  %v501_v0 = vmul.f32 %v3818_v18, %v4242_v47  ;;  %3006 = vmatmul.mubr.msk.f32.gmra.mrb[12].mxu1 %vm284_vm3, %v882_v5  ;;  %3269 = vmatmul.mubr.msk.f32.vlgmr.msra.gmra.mrb[18].mxu0 %vm284_vm3, %v882_v5  ;;  %v822_v11 = vmul.f32 %v4212_v4, %v509_v43  ;;  %v4749_v47 = vsub.f32 1.0, %v4272_v55  ;;  %v1392_v41 = vlaneseq }
 0x238   :  { %v503_v12 = vmul.f32 %v3820_v49, %v4244_v48  ;;  %3271 = vmatprep.mubr.msk.f32.mxu0 %vm284_vm3, %v883_v35  ;;  %1249 = vmatprep.mubr.f32.mxu1 %v4746_v29  ;;  %v823_v30 = vmul.f32 %v4257_v53, %v510_v63  ;;  %v60_v48 = vld [vmem:[#allocation2 + $0x100] sm:$0xff] }
 0x239   :  { %v878_v9 = vmul.f32 %v870_v39, %v4749_v47  ;;  %v884_v38 = vadd.f32 %v876_v32, %v822_v11  ;;  %3475 = vmatpush1.bf16.msra.mxu1 %v4376_v28  ;;  %v511_v4 = vmul.f32 %v501_v0, %v4074_v13  ;;  %3486 = vmatpush3.bf16.msra.mxu0 %v4385_v7  ;;  %v1393_v37 = vshrl.u32 %v1392_v41, 7 }
 0x23a   :  { %v3822_v58 = vpop.eup %3821  ;;  %v885_v25 = vadd.f32 %v877_v59, %v823_v30  ;;  %v512_v53 = vmul.f32 %v503_v12, %v4079_v14  ;;  %3477 = vmatprep.subr.bf16.mxu1 %v4387_v46  ;;  %3487 = vmatprep.subr.bf16.mxu0 %v4750_v19  ;;  %v4459_v14 = vpack.c.bf16 %v60_v48, %v57_v61 }
 0x23b   :  { %v505_v8 = vmul.f32 %v3822_v58, %v4250_v51  ;;  %3007 = vmatmul.mubr.msk.f32.gmra.mrb[14].mxu1 %vm284_vm3, %v883_v35  ;;  %3272 = vmatmul.mubr.msk.f32.gmra.mrb[20].mxu0 %vm284_vm3, %v884_v38  ;;  %v824_v13 = vmul.f32 %v4272_v55, %v511_v4  ;;  %v880_v51 = vmul.f32 %v872_v40, %v834_v50  ;;  %v63_v55 = vld [vmem:[#allocation2 + $0x118] sm:$0xff]  ;;  %v1402_v3 = vsub.s32 2, %v1393_v37 }
 0x23c   :  { %3274 = vmatprep.mubr.msk.f32.mxu0 %vm284_vm3, %v885_v25  ;;  %1255 = vmatprep.mubr.f32.mxu1 %v4746_v29  ;;  %v825_v22 = vmul.f32 %v4284_v56, %v512_v53  ;;  %v4475_v1 = vpack.c.bf16 %v66_v27, %v63_v55  ;;  %v1398_v47 = vsub.s32 1, %v1393_v37 }
 0x23d   :  { %v886_v31 = vadd.f32 %v878_v9, %v824_v13  ;;  %v513_v6 = vmul.f32 %v505_v8, %v4088_v15  ;;  %3479 = vmatpush1.bf16.msra.mxu1 %v4389_v21  ;;  %3489 = vmatpush3.bf16.msra.mxu0 %v4424_v26  ;;  %v3824_v15 = vpop.eup %3823  ;;  %v1403_v35 = vrot.slane %v2929_v36, %v1402_v3  ;;  %v1394_v9 = vsub.s32 0, %v1393_v37 }
 0x23e   :  { %v887_v42 = vadd.f32 %v879_v24, %v825_v22  ;;  %3490 = vmatprep.subr.bf16.mxu0 %v4750_v19  ;;  %3481 = vmatprep.subr.bf16.mxu1 %v4431_v44  ;;  %v4534_v61 = vrot.slane %v2929_v36, %v1398_v47  ;;  %v787_v8 = vmax.f32 %v4321_v10, 0.0 }
 0x23f   :  { %3008 = vmatmul.mubr.msk.f32.gmra.mrb[16].mxu1 %vm284_vm3, %v884_v38  ;;  %3275 = vmatmul.mubr.msk.f32.gmra.mrb[22].mxu0 %vm284_vm3, %v886_v31  ;;  %v826_v56 = vmul.f32 %v4296_v57, %v513_v6  ;;  %v4481_v57 = vmul.f32 0.0, %v3824_v15  ;;  %v4536_v50 = vrot.slane %v2929_v36, %v1394_v9 }
 0x240   :  { %3277 = vmatprep.mubr.msk.f32.mxu0 %vm284_vm3, %v887_v42  ;;  %1261 = vmatprep.mubr.f32.mxu1 %v4746_v29  ;;  %v795_v22 = vsub.f32 0.0, %v787_v8 }
 0x241   :  { %v888_v45 = vadd.f32 %v880_v51, %v826_v56  ;;  %3492 = vmatpush3.bf16.msra.mxu0 %v4459_v14  ;;  %3483 = vmatpush1.bf16.msra.mxu1 %v4461_v20 }
 0x242   :  { %3493 = vmatprep.subr.bf16.mxu0 %v4750_v19  ;;  %3497 = vmatprep.subr.bf16.mxu1 %v4311_v2 }
 0x243   :  { %3009 = vmatmul.mubr.msk.f32.gmra.mrb[18].mxu1 %vm284_vm3, %v885_v25  ;;  %3278 = vmatmul.mubr.msk.f32.gmra.mrb[24].mxu0 %vm284_vm3, %v888_v45 }
 0x244   :  { %1267 = vmatprep.mubr.f32.mxu1 %v4746_v29  ;;  %3296 = vmatprep.mubr.msk.f32.mxu0 %vm3971_vm0, %v4746_v29 }
 0x245   :  { %3495 = vmatpush3.bf16.msra.mxu0 %v4475_v1 }
 0x246   :  { %3512 = vmatprep.subr.bf16.mxu0 %v4750_v19 }
 0x247   :  { %3010 = vmatmul.mubr.msk.f32.gmra.mrb[20].mxu1 %vm284_vm3, %v886_v31 }
 0x248   :  { %1273 = vmatprep.mubr.f32.mxu1 %v4746_v29  ;;  %3297 = vmatmul.mubr.msk.f32.vlgmr.msra.gmra.mrb[26].mxu0 %vm1432_vm5, %v4481_v57 }
 0x249   :  { %3514 = vmatpush3.bf16.msra.mxu0 %v4385_v7  ;;  %3315 = vmatprep.mubr.msk.f32.mxu0 %vm3971_vm0, %v4746_v29 }
 0x24a   :  { %3515 = vmatprep.subr.bf16.mxu0 %v4750_v19 }
 0x24b   :  { %3011 = vmatmul.mubr.msk.f32.gmra.mrb[22].mxu1 %vm284_vm3, %v887_v42  ;;  %v804_v42 = vmul.f32 1.442695, %v795_v22 }
 0x24c   :  { %1279 = vmatprep.mubr.f32.mxu1 %v4746_v29 }
 0x24d   :  { %3517 = vmatpush3.bf16.msra.mxu0 %v4424_v26 }
 0x24e   :  { %3518 = vmatprep.subr.bf16.mxu0 %v4750_v19 }
 0x24f   :  { %3012 = vmatmul.mubr.msk.f32.gmra.mrb[24].mxu1 %vm284_vm3, %v888_v45 }
 0x250   :  { %1500 = vmatprep.mubr.f32.mxu1 %v4746_v29 }
 0x251   :  { %3520 = vmatpush3.bf16.msra.mxu0 %v4459_v14 }
 0x252   :  { %3521 = vmatprep.subr.bf16.mxu0 %v4750_v19 }
 0x253   :  { %3022 = vmatmul.mubr.msk.f32.vlgmr.msra.gmra.mrb[10].mxu1 %vm1432_vm5, %v4481_v57 }
 0x254   :  { %3499 = vmatpush1.bf16.msra.mxu1 %v4370_v62  ;;  %1666 = vmatprep.mubr.f32.mxu1 %v4746_v29 }
 0x255   :  { %3501 = vmatprep.subr.bf16.mxu1 %v4374_v34  ;;  %3523 = vmatpush3.bf16.msra.mxu0 %v4475_v1 }
 0x256   :  { %3540 = vmatprep.subr.bf16.mxu0 %v4750_v19 }
 0x258   :  { %3503 = vmatpush1.bf16.msra.mxu1 %v4376_v28 }
 0x259   :  { %3505 = vmatprep.subr.bf16.mxu1 %v4387_v46 }
 0x25c   :  { %3507 = vmatpush1.bf16.msra.mxu1 %v4389_v21 }
 0x25d   :  { %3509 = vmatprep.subr.bf16.mxu1 %v4431_v44 }
 0x260   :  { %3511 = vmatpush1.bf16.msra.mxu1 %v4461_v20 }
 0x261   :  { %3525 = vmatprep.subr.bf16.mxu1 %v4311_v2 }
 0x30a   :  { %v3270_v39 = vpop.f32.mrb[18].mxu0 }
 0x30b   :  { %v4520_v5 = vadd.f32 %v3270_v39, %v1403_v35  ;;  %v1352_v43 = vpop.f32.mrb[19].mxu0 }
 0x30c   :  { %v1409_v31 = vadd.f32 %v1403_v35, %v1352_v43 }
 0x30e   :  { %v3273_v33 = vpop.f32.mrb[20].mxu0 }
 0x30f   :  { %v4522_v16 = vadd.f32 %v3273_v33, %v1403_v35  ;;  %v1362_v18 = vpop.f32.mrb[21].mxu0 }
 0x310   :  { %v4524_v63 = vadd.f32 %v1403_v35, %v1362_v18 }
 0x312   :  { %v3276_v54 = vpop.f32.mrb[22].mxu0 }
 0x313   :  { %v4526_v59 = vadd.f32 %v3276_v54, %v1403_v35  ;;  %v1372_v23 = vpop.f32.mrb[23].mxu0 }
 0x314   :  { %v4528_v49 = vadd.f32 %v1403_v35, %v1372_v23 }
 0x316   :  { %v3279_v0 = vpop.f32.mrb[24].mxu0 }
 0x317   :  { %v4530_v11 = vadd.f32 %v3279_v0, %v1403_v35  ;;  %v1382_v60 = vpop.f32.mrb[25].mxu0 }
 0x318   :  { %v4532_v32 = vadd.f32 %v1403_v35, %v1382_v60 }
 0x31b   :  { %v1573_v12 = vpop.f32.mrb[26].mxu0 }
 0x31c   :  { %v3298_v30 = vpop.f32.mrb[27].mxu0 }
 0x326   :  { %v1502_v38 = vpop.f32.mrb[10].mxu1 }
 0x327   :  { %v1504_v4 = vpop.f32.mrb[11].mxu1  ;;  %v3710_v48 = vadd.f32 %v1502_v38, %v4536_v50 }
 0x328   :  { %v3711_v40 = vadd.f32 %v1504_v4, %v4534_v61 }
 0x329   :  { %v3024_v17 = vmul.f32 -1.442695, %v3710_v48 }
 0x32a   :  { %v3025_v52 = vmul.f32 -1.442695, %v3711_v40 }
 0x32c   :  { %3825 = vpow2.f32 %v3025_v52 }
 0x32d   :  { %3827 = vpow2.f32 %v3024_v17 }
 0x336   :  { %v3826_v58 = vpop.eup %3825 }
 0x337   :  { %v1588_v25 = vadd.f32 1.0, %v3826_v58  ;;  %v3828_v53 = vpop.eup %3827 }
 0x338   :  { %v1581_v24 = vadd.f32 1.0, %v3828_v53 }
 0x339   :  { %3829 = vrcp.f32 %v1588_v25 }
 0x33a   :  { %3831 = vrcp.f32 %v1581_v24 }
 0x343   :  { %v3830_v13 = vpop.eup %3829 }
 0x344   :  { %v1591_v6 = vmul.f32 %v3830_v13, %v1573_v12  ;;  %v3832_v55 = vpop.eup %3831  ;;  %v4751_v12 = vld [vmem:[#allocation10_spill] sm:$0xff] }
 0x345   :  { %v1594_v27 = vsub.f32 1.0, %v3832_v55  ;;  %v788_v30 = vmax.f32 %v4751_v12, 0.0 }
 0x346   :  { %v1592_v51 = vadd.f32 %v1591_v6, %v1409_v31 }
 0x347   :  { %v1595_v15 = vmul.f32 %v1594_v27, %v4481_v57  ;;  %v796_v9 = vsub.f32 0.0, %v788_v30 }
 0x348   :  { %3833 = vtanh.f32 %v1592_v51 }
 0x349   :  { %3835 = vpow2.f32 %v804_v42  ;;  %v806_v40 = vmul.f32 1.442695, %v796_v9 }
 0x352   :  { %v3834_v56 = vpop.eup %3833 }
 0x353   :  { %v1596_v45 = vmul.f32 %v3834_v56, %v3832_v55  ;;  %v3836_v37 = vpop.eup %3835 }
 0x355   :  { %v1597_v41 = vadd.f32 %v1596_v45, %v1595_v15 }
 0x357   :  { %v1598_v3 = vmul.f32 %v3836_v37, %v1597_v41  ;;  %v4752_v41 = vld [vmem:[#allocation9_spill] sm:$0xff] }
 0x358   :  { %v789_v37 = vmax.f32 %v4752_v41, 0.0 }
 0x359   :  { %3026 = vmatmul.mubr.msk.f32.vlgmr.msra.gmra.mrb[12].mxu1 %vm1432_vm5, %v1598_v3  ;;  %3316 = vmatmul.mubr.msk.f32.vlgmr.msra.gmra.mrb[28].mxu0 %vm1432_vm5, %v1598_v3 }
 0x35a   :  { %3527 = vmatpush1.bf16.msra.mxu1 %v4370_v62  ;;  %3542 = vmatpush3.bf16.msra.mxu0 %v4385_v7 }
 0x35b   :  { %3529 = vmatprep.subr.bf16.mxu1 %v4374_v34  ;;  %3543 = vmatprep.subr.bf16.mxu0 %v4750_v19 }
 0x35c   :  { %1832 = vmatprep.mubr.f32.mxu1 %v4746_v29  ;;  %3334 = vmatprep.mubr.msk.f32.mxu0 %vm3971_vm0, %v4746_v29 }
 0x35e   :  { %3531 = vmatpush1.bf16.msra.mxu1 %v4376_v28  ;;  %3545 = vmatpush3.bf16.msra.mxu0 %v4424_v26 }
 0x35f   :  { %3533 = vmatprep.subr.bf16.mxu1 %v4387_v46  ;;  %3546 = vmatprep.subr.bf16.mxu0 %v4750_v19 }
 0x362   :  { %3535 = vmatpush1.bf16.msra.mxu1 %v4389_v21  ;;  %3548 = vmatpush3.bf16.msra.mxu0 %v4459_v14 }
 0x363   :  { %3537 = vmatprep.subr.bf16.mxu1 %v4431_v44  ;;  %3549 = vmatprep.subr.bf16.mxu0 %v4750_v19 }
 0x366   :  { %3539 = vmatpush1.bf16.msra.mxu1 %v4461_v20  ;;  %3551 = vmatpush3.bf16.msra.mxu0 %v4475_v1 }
 0x367   :  { %3553 = vmatprep.subr.bf16.mxu1 %v4311_v2  ;;  %3568 = vmatprep.subr.bf16.mxu0 %v4750_v19 }
 0x42c   :  { %v1668_v10 = vpop.f32.mrb[12].mxu1  ;;  %v1739_v57 = vpop.f32.mrb[28].mxu0 }
 0x42d   :  { %v1670_v36 = vpop.f32.mrb[13].mxu1  ;;  %v3317_v35 = vpop.f32.mrb[29].mxu0  ;;  %v3712_v43 = vadd.f32 %v1668_v10, %v4536_v50  ;;  %v797_v10 = vsub.f32 0.0, %v789_v37 }
 0x42e   :  { %v3713_v39 = vadd.f32 %v1670_v36, %v4534_v61 }
 0x42f   :  { %v3028_v18 = vmul.f32 -1.442695, %v3712_v43  ;;  %v808_v35 = vmul.f32 1.442695, %v797_v10 }
 0x430   :  { %v3029_v33 = vmul.f32 -1.442695, %v3713_v39 }
 0x432   :  { %3837 = vpow2.f32 %v3029_v33 }
 0x433   :  { %3839 = vpow2.f32 %v3028_v18 }
 0x43c   :  { %v3838_v54 = vpop.eup %3837 }
 0x43d   :  { %v1754_v23 = vadd.f32 1.0, %v3838_v54  ;;  %v3840_v0 = vpop.eup %3839 }
 0x43e   :  { %v1747_v60 = vadd.f32 1.0, %v3840_v0 }
 0x43f   :  { %3841 = vrcp.f32 %v1754_v23 }
 0x440   :  { %3843 = vrcp.f32 %v1747_v60 }
 0x449   :  { %v3842_v47 = vpop.eup %3841 }
 0x44a   :  { %v1757_v38 = vmul.f32 %v3842_v47, %v1739_v57  ;;  %v3844_v48 = vpop.eup %3843 }
 0x44b   :  { %v1760_v52 = vsub.f32 1.0, %v3844_v48 }
 0x44c   :  { %v1758_v4 = vadd.f32 %v1757_v38, %v4520_v5 }
 0x44d   :  { %v1761_v58 = vmul.f32 %v1760_v52, %v1598_v3 }
 0x44e   :  { %3845 = vtanh.f32 %v1758_v4 }
 0x44f   :  { %3847 = vpow2.f32 %v806_v40 }
 0x458   :  { %v3846_v17 = vpop.eup %3845 }
 0x459   :  { %v1762_v25 = vmul.f32 %v3846_v17, %v3844_v48  ;;  %v3848_v24 = vpop.eup %3847 }
 0x45b   :  { %v1763_v53 = vadd.f32 %v1762_v25, %v1761_v58  ;;  %v4753_v25 = vld [vmem:[#allocation12_spill] sm:$0xff] }
 0x45d   :  { %v1764_v8 = vmul.f32 %v3848_v24, %v1763_v53  ;;  %v790_v53 = vmax.f32 %v4753_v25, 0.0 }
 0x45f   :  { %3030 = vmatmul.mubr.msk.f32.vlgmr.msra.gmra.mrb[14].mxu1 %vm1432_vm5, %v1764_v8  ;;  %3335 = vmatmul.mubr.msk.f32.vlgmr.msra.gmra.mrb[30].mxu0 %vm1432_vm5, %v1764_v8 }
 0x460   :  { %3555 = vmatpush1.bf16.msra.mxu1 %v4370_v62  ;;  %3570 = vmatpush3.bf16.msra.mxu0 %v4385_v7 }
 0x461   :  { %3557 = vmatprep.subr.bf16.mxu1 %v4374_v34  ;;  %3571 = vmatprep.subr.bf16.mxu0 %v4750_v19 }
 0x462   :  { %1998 = vmatprep.mubr.f32.mxu1 %v4746_v29  ;;  %3353 = vmatprep.mubr.msk.f32.mxu0 %vm3971_vm0, %v4746_v29 }
 0x464   :  { %3559 = vmatpush1.bf16.msra.mxu1 %v4376_v28  ;;  %3573 = vmatpush3.bf16.msra.mxu0 %v4424_v26 }
 0x465   :  { %3561 = vmatprep.subr.bf16.mxu1 %v4387_v46  ;;  %3574 = vmatprep.subr.bf16.mxu0 %v4750_v19 }
 0x468   :  { %3563 = vmatpush1.bf16.msra.mxu1 %v4389_v21  ;;  %3576 = vmatpush3.bf16.msra.mxu0 %v4459_v14 }
 0x469   :  { %3565 = vmatprep.subr.bf16.mxu1 %v4431_v44  ;;  %3577 = vmatprep.subr.bf16.mxu0 %v4750_v19 }
 0x46c   :  { %3567 = vmatpush1.bf16.msra.mxu1 %v4461_v20  ;;  %3579 = vmatpush3.bf16.msra.mxu0 %v4475_v1 }
 0x46d   :  { %3581 = vmatprep.subr.bf16.mxu1 %v4311_v2  ;;  %3596 = vmatprep.subr.bf16.mxu0 %v4750_v19 }
 0x532   :  { %v1834_v5 = vpop.f32.mrb[14].mxu1  ;;  %v1905_v13 = vpop.f32.mrb[30].mxu0 }
 0x533   :  { %v1836_v22 = vpop.f32.mrb[15].mxu1  ;;  %v3336_v31 = vpop.f32.mrb[31].mxu0  ;;  %v3714_v51 = vadd.f32 %v1834_v5, %v4536_v50 }
 0x534   :  { %v3715_v6 = vadd.f32 %v1836_v22, %v4534_v61 }
 0x535   :  { %v3032_v55 = vmul.f32 -1.442695, %v3714_v51 }
 0x536   :  { %v3033_v42 = vmul.f32 -1.442695, %v3715_v6 }
 0x538   :  { %3849 = vpow2.f32 %v3033_v42 }
 0x539   :  { %3851 = vpow2.f32 %v3032_v55 }
 0x542   :  { %v3850_v27 = vpop.eup %3849 }
 0x543   :  { %v1920_v56 = vadd.f32 1.0, %v3850_v27  ;;  %v3852_v15 = vpop.eup %3851 }
 0x544   :  { %v1913_v45 = vadd.f32 1.0, %v3852_v15 }
 0x545   :  { %3853 = vrcp.f32 %v1920_v56 }
 0x546   :  { %3855 = vrcp.f32 %v1913_v45 }
 0x54f   :  { %v3854_v3 = vpop.eup %3853 }
 0x550   :  { %v1923_v57 = vmul.f32 %v3854_v3, %v1905_v13  ;;  %v3856_v39 = vpop.eup %3855 }
 0x551   :  { %v1926_v43 = vsub.f32 1.0, %v3856_v39 }
 0x552   :  { %v1924_v36 = vadd.f32 %v1923_v57, %v4524_v63 }
 0x553   :  { %v1927_v18 = vmul.f32 %v1926_v43, %v1764_v8  ;;  %v798_v8 = vsub.f32 0.0, %v790_v53 }
 0x554   :  { %3857 = vtanh.f32 %v1924_v36 }
 0x555   :  { %3859 = vpow2.f32 %v808_v35  ;;  %v810_v22 = vmul.f32 1.442695, %v798_v8 }
 0x55e   :  { %v3858_v33 = vpop.eup %3857 }
 0x55f   :  { %v1928_v54 = vmul.f32 %v3858_v33, %v3856_v39  ;;  %v3860_v0 = vpop.eup %3859 }
 0x561   :  { %v1929_v23 = vadd.f32 %v1928_v54, %v1927_v18  ;;  %v4754_v18 = vld [vmem:[#allocation11_spill] sm:$0xff] }
 0x562   :  { %v791_v54 = vmax.f32 %v4754_v18, 0.0 }
 0x563   :  { %v1930_v60 = vmul.f32 %v3860_v0, %v1929_v23 }
 0x564   :  { %v799_v0 = vsub.f32 0.0, %v791_v54 }
 0x565   :  { %3034 = vmatmul.mubr.msk.f32.vlgmr.msra.gmra.mrb[16].mxu1 %vm1432_vm5, %v1930_v60  ;;  %3354 = vmatmul.mubr.msk.f32.vlgmr.msra.gmra.mrb[32].mxu0 %vm1432_vm5, %v1930_v60 }
 0x566   :  { %3583 = vmatpush1.bf16.msra.mxu1 %v4370_v62  ;;  %3598 = vmatpush3.bf16.msra.mxu0 %v4385_v7 }
 0x567   :  { %3585 = vmatprep.subr.bf16.mxu1 %v4374_v34  ;;  %3599 = vmatprep.subr.bf16.mxu0 %v4750_v19 }
 0x568   :  { %2164 = vmatprep.mubr.f32.mxu1 %v4746_v29  ;;  %3372 = vmatprep.mubr.msk.f32.mxu0 %vm3971_vm0, %v4746_v29 }
 0x56a   :  { %3587 = vmatpush1.bf16.msra.mxu1 %v4376_v28  ;;  %3601 = vmatpush3.bf16.msra.mxu0 %v4424_v26 }
 0x56b   :  { %3589 = vmatprep.subr.bf16.mxu1 %v4387_v46  ;;  %3602 = vmatprep.subr.bf16.mxu0 %v4750_v19 }
 0x56e   :  { %3591 = vmatpush1.bf16.msra.mxu1 %v4389_v21  ;;  %3604 = vmatpush3.bf16.msra.mxu0 %v4459_v14 }
 0x56f   :  { %3593 = vmatprep.subr.bf16.mxu1 %v4431_v44  ;;  %3605 = vmatprep.subr.bf16.mxu0 %v4750_v19 }
 0x572   :  { %3595 = vmatpush1.bf16.msra.mxu1 %v4461_v20  ;;  %3607 = vmatpush3.bf16.msra.mxu0 %v4475_v1 }
 0x573   :  { %3609 = vmatprep.subr.bf16.mxu1 %v4311_v2  ;;  %3624 = vmatprep.subr.bf16.mxu0 %v4750_v19 }
 0x638   :  { %v2000_v63 = vpop.f32.mrb[16].mxu1  ;;  %v2071_v12 = vpop.f32.mrb[32].mxu0 }
 0x639   :  { %v2002_v30 = vpop.f32.mrb[17].mxu1  ;;  %v3355_v47 = vpop.f32.mrb[33].mxu0  ;;  %v3716_v38 = vadd.f32 %v2000_v63, %v4536_v50 }
 0x63a   :  { %v3717_v9 = vadd.f32 %v2002_v30, %v4534_v61 }
 0x63b   :  { %v3036_v40 = vmul.f32 -1.442695, %v3716_v38 }
 0x63c   :  { %v3037_v4 = vmul.f32 -1.442695, %v3717_v9 }
 0x63e   :  { %3861 = vpow2.f32 %v3037_v4 }
 0x63f   :  { %3863 = vpow2.f32 %v3036_v40 }
 0x648   :  { %v3862_v48 = vpop.eup %3861 }
 0x649   :  { %v2086_v52 = vadd.f32 1.0, %v3862_v48  ;;  %v3864_v17 = vpop.eup %3863 }
 0x64a   :  { %v2079_v58 = vadd.f32 1.0, %v3864_v17 }
 0x64b   :  { %3865 = vrcp.f32 %v2086_v52 }
 0x64c   :  { %3867 = vrcp.f32 %v2079_v58 }
 0x655   :  { %v3866_v24 = vpop.eup %3865 }
 0x656   :  { %v2089_v5 = vmul.f32 %v3866_v24, %v2071_v12  ;;  %v3868_v31 = vpop.eup %3867  ;;  %v812_v12 = vmul.f32 1.442695, %v799_v0 }
 0x657   :  { %v2092_v6 = vsub.f32 1.0, %v3868_v31 }
 0x658   :  { %v2090_v13 = vadd.f32 %v2089_v5, %v4522_v16 }
 0x659   :  { %v2093_v42 = vmul.f32 %v2092_v6, %v1930_v60 }
 0x65a   :  { %3869 = vtanh.f32 %v2090_v13 }
 0x65b   :  { %3871 = vpow2.f32 %v810_v22 }
 0x664   :  { %v3870_v51 = vpop.eup %3869 }
 0x665   :  { %v2094_v55 = vmul.f32 %v3870_v51, %v3868_v31  ;;  %v3872_v56 = vpop.eup %3871 }
 0x667   :  { %v2095_v27 = vadd.f32 %v2094_v55, %v2093_v42 }
 0x669   :  { %v2096_v15 = vmul.f32 %v3872_v56, %v2095_v27 }
 0x66b   :  { %3038 = vmatmul.mubr.msk.f32.vlgmr.msra.gmra.mrb[18].mxu1 %vm1432_vm5, %v2096_v15  ;;  %3373 = vmatmul.mubr.msk.f32.vlgmr.msra.gmra.mrb[34].mxu0 %vm1432_vm5, %v2096_v15 }
 0x66c   :  { %3611 = vmatpush1.bf16.msra.mxu1 %v4370_v62  ;;  %3626 = vmatpush3.bf16.msra.mxu0 %v4385_v7 }
 0x66d   :  { %3613 = vmatprep.subr.bf16.mxu1 %v4374_v34  ;;  %3627 = vmatprep.subr.bf16.mxu0 %v4750_v19 }
 0x66e   :  { %2330 = vmatprep.mubr.f32.mxu1 %v4746_v29  ;;  %3391 = vmatprep.mubr.msk.f32.mxu0 %vm3971_vm0, %v4746_v29 }
 0x670   :  { %3615 = vmatpush1.bf16.msra.mxu1 %v4376_v28  ;;  %3629 = vmatpush3.bf16.msra.mxu0 %v4424_v26 }
 0x671   :  { %3617 = vmatprep.subr.bf16.mxu1 %v4387_v46  ;;  %3630 = vmatprep.subr.bf16.mxu0 %v4750_v19 }
 0x674   :  { %3619 = vmatpush1.bf16.msra.mxu1 %v4389_v21  ;;  %3632 = vmatpush3.bf16.msra.mxu0 %v4459_v14 }
 0x675   :  { %3621 = vmatprep.subr.bf16.mxu1 %v4431_v44  ;;  %3633 = vmatprep.subr.bf16.mxu0 %v4750_v19 }
 0x678   :  { %3623 = vmatpush1.bf16.msra.mxu1 %v4461_v20  ;;  %3635 = vmatpush3.bf16.msra.mxu0 %v4475_v1 }
 0x679   :  { %3637 = vmatprep.subr.bf16.mxu1 %v4311_v2  ;;  %3652 = vmatprep.subr.bf16.mxu0 %v4750_v19 }
 0x73e   :  { %v2166_v16 = vpop.f32.mrb[18].mxu1  ;;  %v2237_v45 = vpop.f32.mrb[34].mxu0 }
 0x73f   :  { %v2168_v41 = vpop.f32.mrb[19].mxu1  ;;  %v3374_v37 = vpop.f32.mrb[35].mxu0  ;;  %v3718_v10 = vadd.f32 %v2166_v16, %v4536_v50 }
 0x740   :  { %v3719_v3 = vadd.f32 %v2168_v41, %v4534_v61 }
 0x741   :  { %v3040_v36 = vmul.f32 -1.442695, %v3718_v10 }
 0x742   :  { %v3041_v57 = vmul.f32 -1.442695, %v3719_v3 }
 0x744   :  { %3873 = vpow2.f32 %v3041_v57 }
 0x745   :  { %3875 = vpow2.f32 %v3040_v36 }
 0x74e   :  { %v3874_v35 = vpop.eup %3873 }
 0x74f   :  { %v2252_v39 = vadd.f32 1.0, %v3874_v35  ;;  %v3876_v43 = vpop.eup %3875 }
 0x750   :  { %v2245_v33 = vadd.f32 1.0, %v3876_v43 }
 0x751   :  { %3877 = vrcp.f32 %v2252_v39 }
 0x752   :  { %3879 = vrcp.f32 %v2245_v33 }
 0x75b   :  { %v3878_v23 = vpop.eup %3877 }
 0x75c   :  { %v2255_v60 = vmul.f32 %v3878_v23, %v2237_v45  ;;  %v3880_v30 = vpop.eup %3879 }
 0x75d   :  { %v2258_v47 = vsub.f32 1.0, %v3880_v30 }
 0x75e   :  { %v2256_v63 = vadd.f32 %v2255_v60, %v4528_v49 }
 0x75f   :  { %v2259_v38 = vmul.f32 %v2258_v47, %v2096_v15 }
 0x760   :  { %3881 = vtanh.f32 %v2256_v63 }
 0x761   :  { %3883 = vpow2.f32 %v812_v12 }
 0x76a   :  { %v3882_v9 = vpop.eup %3881 }
 0x76b   :  { %v2260_v4 = vmul.f32 %v3882_v9, %v3880_v30  ;;  %v3884_v48 = vpop.eup %3883 }
 0x76d   :  { %v2261_v40 = vadd.f32 %v2260_v4, %v2259_v38  ;;  %v71_v4 = vld [vmem:[#allocation2 + $0x198] sm:$0xff] }
 0x76f   :  { %v2262_v52 = vmul.f32 %v3884_v48, %v2261_v40  ;;  %v73_v48 = vld [vmem:[#allocation2 + $0x1c8] sm:$0xff] }
 0x771   :  { %3042 = vmatmul.mubr.msk.f32.vlgmr.msra.gmra.mrb[20].mxu1 %vm1432_vm5, %v2262_v52  ;;  %3392 = vmatmul.mubr.msk.f32.vlgmr.msra.gmra.mrb[36].mxu0 %vm1432_vm5, %v2262_v52 }
 0x772   :  { %3639 = vmatpush1.bf16.msra.mxu1 %v4370_v62  ;;  %3654 = vmatpush3.bf16.msra.mxu0 %v4385_v7 }
 0x773   :  { %3641 = vmatprep.subr.bf16.mxu1 %v4374_v34  ;;  %3655 = vmatprep.subr.bf16.mxu0 %v4750_v19 }
 0x774   :  { %2496 = vmatprep.mubr.f32.mxu1 %v4746_v29  ;;  %3410 = vmatprep.mubr.msk.f32.mxu0 %vm3971_vm0, %v4746_v29 }
 0x776   :  { %3643 = vmatpush1.bf16.msra.mxu1 %v4376_v28  ;;  %3657 = vmatpush3.bf16.msra.mxu0 %v4424_v26 }
 0x777   :  { %3645 = vmatprep.subr.bf16.mxu1 %v4387_v46  ;;  %3658 = vmatprep.subr.bf16.mxu0 %v4750_v19 }
 0x77a   :  { %3647 = vmatpush1.bf16.msra.mxu1 %v4389_v21  ;;  %3660 = vmatpush3.bf16.msra.mxu0 %v4459_v14 }
 0x77b   :  { %3649 = vmatprep.subr.bf16.mxu1 %v4431_v44  ;;  %3661 = vmatprep.subr.bf16.mxu0 %v4750_v19 }
 0x77e   :  { %3651 = vmatpush1.bf16.msra.mxu1 %v4461_v20  ;;  %3663 = vmatpush3.bf16.msra.mxu0 %v4475_v1 }
 0x77f   :  { %3665 = vmatprep.subr.bf16.mxu1 %v4311_v2  ;;  %3680 = vmatprep.subr.bf16.mxu0 %v4750_v19  ;;  %v4755_v2 = vld [vmem:[#allocation14_spill] sm:$0xff] }
 0x780   :  { %v792_v51 = vmax.f32 %v4755_v2, 0.0 }
 0x782   :  { %v800_v55 = vsub.f32 0.0, %v792_v51 }
 0x784   :  { %v814_v15 = vmul.f32 1.442695, %v800_v55 }
 0x844   :  { %v2332_v49 = vpop.f32.mrb[20].mxu1  ;;  %v2403_v17 = vpop.f32.mrb[36].mxu0 }
 0x845   :  { %v2334_v58 = vpop.f32.mrb[21].mxu1  ;;  %v3393_v25 = vpop.f32.mrb[37].mxu0  ;;  %v3720_v24 = vadd.f32 %v2332_v49, %v4536_v50 }
 0x846   :  { %v3721_v53 = vadd.f32 %v2334_v58, %v4534_v61  ;;  %v76_v58 = vld [vmem:[#allocation2 + $0x210] sm:$0xff] }
 0x847   :  { %v3044_v5 = vmul.f32 -1.442695, %v3720_v24  ;;  %v78_v24 = vld [vmem:[#allocation2 + $0x240] sm:$0xff] }
 0x848   :  { %v3045_v8 = vmul.f32 -1.442695, %v3721_v53  ;;  %v77_v53 = vld [vmem:[#allocation2 + $0x228] sm:$0xff] }
 0x84a   :  { %3885 = vpow2.f32 %v3045_v8  ;;  %v3702_v8 = vpack.c.bf16 %v78_v24, %v77_v53 }
 0x84b   :  { %3887 = vpow2.f32 %v3044_v5 }
 0x854   :  { %v3886_v13 = vpop.eup %3885 }
 0x855   :  { %v2418_v22 = vadd.f32 1.0, %v3886_v13  ;;  %v3888_v31 = vpop.eup %3887 }
 0x856   :  { %v2411_v6 = vadd.f32 1.0, %v3888_v31 }
 0x857   :  { %3889 = vrcp.f32 %v2418_v22 }
 0x858   :  { %3891 = vrcp.f32 %v2411_v6 }
 0x861   :  { %v3890_v42 = vpop.eup %3889 }
 0x862   :  { %v2421_v27 = vmul.f32 %v3890_v42, %v2403_v17  ;;  %v3892_v16 = vpop.eup %3891  ;;  %v75_v17 = vld [vmem:[#allocation2 + $0x1f8] sm:$0xff] }
 0x863   :  { %v2424_v45 = vsub.f32 1.0, %v3892_v16  ;;  %v3699_v25 = vpack.c.bf16 %v76_v58, %v75_v17 }
 0x864   :  { %v2422_v56 = vadd.f32 %v2421_v27, %v4526_v59 }
 0x865   :  { %v2425_v37 = vmul.f32 %v2424_v45, %v2262_v52  ;;  %v74_v52 = vld [vmem:[#allocation2 + $0x1e0] sm:$0xff] }
 0x866   :  { %3893 = vtanh.f32 %v2422_v56  ;;  %v3696_v49 = vpack.c.bf16 %v74_v52, %v73_v48 }
 0x867   :  { %3895 = vpow2.f32 %v814_v15 }
 0x870   :  { %v3894_v41 = vpop.eup %3893 }
 0x871   :  { %v2426_v3 = vmul.f32 %v3894_v41, %v3892_v16  ;;  %v3896_v57 = vpop.eup %3895 }
 0x873   :  { %v2427_v10 = vadd.f32 %v2426_v3, %v2425_v37 }
 0x875   :  { %v2428_v36 = vmul.f32 %v3896_v57, %v2427_v10  ;;  %v68_v10 = vld [vmem:[#allocation2 + $0x150] sm:$0xff] }
 0x877   :  { %3046 = vmatmul.mubr.msk.f32.vlgmr.msra.gmra.mrb[22].mxu1 %vm1432_vm5, %v2428_v36  ;;  %3411 = vmatmul.mubr.msk.f32.vlgmr.msra.gmra.mrb[38].mxu0 %vm1432_vm5, %v2428_v36 }
 0x878   :  { %3667 = vmatpush1.bf16.msra.mxu1 %v4370_v62  ;;  %3682 = vmatpush3.bf16.msra.mxu0 %v4385_v7 }
 0x879   :  { %3669 = vmatprep.subr.bf16.mxu1 %v4374_v34  ;;  %3683 = vmatprep.subr.bf16.mxu0 %v4750_v19 }
 0x87a   :  { %2662 = vmatprep.mubr.f32.mxu1 %v4746_v29  ;;  %3429 = vmatprep.mubr.msk.f32.mxu0 %vm3971_vm0, %v4746_v29 }
 0x87c   :  { %3671 = vmatpush1.bf16.msra.mxu1 %v4376_v28  ;;  %3685 = vmatpush3.bf16.msra.mxu0 %v4424_v26 }
 0x87d   :  { %3673 = vmatprep.subr.bf16.mxu1 %v4387_v46  ;;  %3686 = vmatprep.subr.bf16.mxu0 %v4750_v19 }
 0x880   :  { %3675 = vmatpush1.bf16.msra.mxu1 %v4389_v21  ;;  %3688 = vmatpush3.bf16.msra.mxu0 %v4459_v14 }
 0x881   :  { %3677 = vmatprep.subr.bf16.mxu1 %v4431_v44  ;;  %3689 = vmatprep.subr.bf16.mxu0 %v4750_v19 }
 0x884   :  { %3679 = vmatpush1.bf16.msra.mxu1 %v4461_v20  ;;  %3691 = vmatpush3.bf16.msra.mxu0 %v4475_v1  ;;  %v4756_v1 = vld [vmem:[#allocation13_spill] sm:$0xff] }
 0x885   :  { %3692 = vmatprep.subr.bf16.mxu0 %v4750_v19  ;;  %v793_v39 = vmax.f32 %v4756_v1, 0.0 }
 0x887   :  { %v801_v33 = vsub.f32 0.0, %v793_v39 }
 0x889   :  { %v816_v23 = vmul.f32 1.442695, %v801_v33 }
 0x94a   :  { %v2498_v34 = vpop.f32.mrb[22].mxu1  ;;  %v2569_v62 = vpop.f32.mrb[38].mxu0 }
 0x94b   :  { %v2500_v28 = vpop.f32.mrb[23].mxu1  ;;  %v3412_v7 = vpop.f32.mrb[39].mxu0  ;;  %v3722_v21 = vadd.f32 %v2498_v34, %v4536_v50 }
 0x94c   :  { %v3723_v46 = vadd.f32 %v2500_v28, %v4534_v61  ;;  %v69_v28 = vld [vmem:[#allocation2 + $0x168] sm:$0xff]  ;;  %v70_v7 = vld [vmem:[#allocation2 + $0x180] sm:$0xff] }
 0x94d   :  { %v3048_v14 = vmul.f32 -1.442695, %v3722_v21  ;;  %v4757_v21 = vld [vmem:[#allocation8_spill] sm:$0xff] }
 0x94e   :  { %v3049_v26 = vmul.f32 -1.442695, %v3723_v46  ;;  %v91_v46 = vld [vmem:[%s4731_s5 + $0x1] ss:$0 sm:$0xff] }
 0x950   :  { %3897 = vpow2.f32 %v3049_v26  ;;  %v245_v26 = vadd.f32 %v4757_v21, %v91_v46 }
 0x951   :  { %3899 = vpow2.f32 %v3048_v14 }
 0x952   :  { %v248_v14 = vmax.f32 %v245_v26, 0.0 }
 0x95a   :  { %v3898_v44 = vpop.eup %3897 }
 0x95b   :  { %v2584_v59 = vadd.f32 1.0, %v3898_v44  ;;  %v3900_v20 = vpop.eup %3899 }
 0x95c   :  { %v2577_v35 = vadd.f32 1.0, %v3900_v20  ;;  %v97_v20 = vld [vmem:[%s4731_s5 + $0x6] ss:$0 sm:$0xff] }
 0x95d   :  { %3901 = vrcp.f32 %v2584_v59 }
 0x95e   :  { %3903 = vrcp.f32 %v2577_v35 }
 0x967   :  { %v3902_v43 = vpop.eup %3901 }
 0x968   :  { %v2587_v18 = vmul.f32 %v3902_v43, %v2569_v62  ;;  %v3904_v0 = vpop.eup %3903 }
 0x969   :  { %v2590_v60 = vsub.f32 1.0, %v3904_v0 }
 0x96a   :  { %v2588_v54 = vadd.f32 %v2587_v18, %v4532_v32  ;;  %v72_v32 = vld [vmem:[#allocation2 + $0x1b0] sm:$0xff] }
 0x96b   :  { %v2591_v12 = vmul.f32 %v2590_v60, %v2428_v36  ;;  %v3693_v40 = vpack.c.bf16 %v72_v32, %v71_v4 }
 0x96c   :  { %3905 = vtanh.f32 %v2588_v54 }
 0x96d   :  { %3907 = vpow2.f32 %v816_v23 }
 0x976   :  { %v3906_v63 = vpop.eup %3905 }
 0x977   :  { %v2592_v30 = vmul.f32 %v3906_v63, %v3904_v0  ;;  %v3908_v9 = vpop.eup %3907 }
 0x979   :  { %v2593_v47 = vadd.f32 %v2592_v30, %v2591_v12 }
 0x97b   :  { %v2594_v38 = vmul.f32 %v3908_v9, %v2593_v47 }
 0x97d   :  { %3050 = vmatmul.mubr.msk.f32.vlgmr.msra.gmra.mrb[24].mxu1 %vm1432_vm5, %v2594_v38  ;;  %3430 = vmatmul.mubr.msk.f32.vlgmr.msra.gmra.mrb[40].mxu0 %vm1432_vm5, %v2594_v38 }
 0x97e   :  { %3448 = vmatprep.mubr.msk.f32.mxu0 %vm3971_vm0, %v4746_v29  ;;  %3694 = vmatpush3.bf16.msra.mxu0 %v3693_v40 }
 0x97f   :  { %3695 = vmatprep.subr.bf16.mxu0 %v4750_v19 }
 0x982   :  { %3697 = vmatpush3.bf16.msra.mxu0 %v3696_v49 }
 0x983   :  { %3698 = vmatprep.subr.bf16.mxu0 %v4750_v19 }
 0x986   :  { %3700 = vmatpush3.bf16.msra.mxu0 %v3699_v25 }
 0x987   :  { %3701 = vmatprep.subr.bf16.mxu0 %v4750_v19 }
 0x98a   :  { %3703 = vmatpush3.bf16.msra.mxu0 %v3702_v8 }
 0x98b   :  { %3704 = vmatprep.subr.bf16.mxu0 %v4750_v19 }
 0xa50   :  { %v2664_v5 = vpop.f32.mrb[24].mxu1  ;;  %v2735_v13 = vpop.f32.mrb[40].mxu0 }
 0xa51   :  { %v2666_v22 = vpop.f32.mrb[25].mxu1  ;;  %v3431_v31 = vpop.f32.mrb[41].mxu0  ;;  %v3724_v2 = vadd.f32 %v2664_v5, %v4536_v50 }
 0xa52   :  { %v3725_v6 = vadd.f32 %v2666_v22, %v4534_v61  ;;  %v67_v61 = vld [vmem:[#allocation2 + $0x138] sm:$0xff] }
 0xa53   :  { %v3052_v42 = vmul.f32 -1.442695, %v3724_v2  ;;  %v3705_v34 = vpack.c.bf16 %v68_v10, %v67_v61 }
 0xa54   :  { %v3053_v51 = vmul.f32 -1.442695, %v3725_v6 }
 0xa56   :  { %3909 = vpow2.f32 %v3053_v51 }
 0xa57   :  { %3911 = vpow2.f32 %v3052_v42 }
 0xa60   :  { %v3910_v55 = vpop.eup %3909 }
 0xa61   :  { %v2750_v27 = vadd.f32 1.0, %v3910_v55  ;;  %v3912_v56 = vpop.eup %3911 }
 0xa62   :  { %v2743_v15 = vadd.f32 1.0, %v3912_v56 }
 0xa63   :  { %3913 = vrcp.f32 %v2750_v27 }
 0xa64   :  { %3915 = vrcp.f32 %v2743_v15 }
 0xa6d   :  { %v3914_v16 = vpop.eup %3913 }
 0xa6e   :  { %v2753_v45 = vmul.f32 %v3914_v16, %v2735_v13  ;;  %v3916_v37 = vpop.eup %3915 }
 0xa6f   :  { %v2756_v3 = vsub.f32 1.0, %v3916_v37 }
 0xa70   :  { %v2754_v41 = vadd.f32 %v2753_v45, %v4530_v11  ;;  %v3708_v11 = vpack.c.bf16 %v70_v7, %v69_v28 }
 0xa71   :  { %v2757_v57 = vmul.f32 %v2756_v3, %v2594_v38 }
 0xa72   :  { %3917 = vtanh.f32 %v2754_v41 }
 0xa7c   :  { %v3918_v50 = vpop.eup %3917 }
 0xa7d   :  { %v2758_v36 = vmul.f32 %v3918_v50, %v3916_v37 }
 0xa7f   :  { %v2759_v62 = vadd.f32 %v2758_v36, %v2757_v57 }
 0xa81   :  { %3449 = vmatmul.mubr.msk.f32.vlgmr.msra.gmra.mrb[42].mxu0 %vm1432_vm5, %v2759_v62 }
 0xa82   :  { %3706 = vmatpush3.bf16.msra.mxu0 %v3705_v34  ;;  %3459 = vmatprep.mubr.msk.f32.mxu0 %vm3971_vm0, %v4746_v29 }
 0xa83   :  { %3707 = vmatprep.subr.bf16.mxu0 %v4750_v19 }
 0xa86   :  { %3709 = vmatpush3.bf16.msra.mxu0 %v3708_v11 }
 0xa89   :  { %3460 = vmatmul.mubr.msk.f32.vlgmr.msra.gmra.mrb[44].mxu0 %vm174_vm4, %v248_v14 }
 0xb54   :  { %v2829_v44 = vpop.f32.mrb[42].mxu0 }
 0xb55   :  { %v3450_v59 = vpop.f32.mrb[43].mxu0 }
 0xb5c   :  { %v2902_v35 = vpop.f32.mrb[44].mxu0 }
 0xb5d   :  { %v2903_v1 = vadd.f32 %v2902_v35, %v2829_v44  ;;  %v3461_v39 = vpop.f32.mrb[45].mxu0 }
 0xb5f   :  { %v2906_v29 = vadd.f32 %v2903_v1, %v97_v20 }
 0xb61   :  { %2907 = vst [vmem:[#allocation5] sm:$0xff] %v2906_v29 }
 0xb62   :  { %3952 = shalt.err (!%p3949_p12)
}
 0xb63   :  { %s3953_s28 = scalar_lea.hbm %s4732_s6, 128 }
 0xb64   :  { %p3954_p13 = scmp.ne.s32.totalorder %s4732_s6, %s3953_s28  ;;  %p3957_p0 = scmp.lt.u32.totalorder %s3953_s28, %s4732_s6 }
 0xb66   :  { %p3959_p1 = pnand %p3957_p0, %p3954_p13 }
 0xb68   :  { %3962 = shalt.err (!%p3959_p1)
}
 0xb69   :  { %2917 = dma.vmem_to_hbm [thread:$0]  %s2915_s25, 128, %s4732_s6, [#allocation4]  }
 0xb6a   :  { %3965 = dma.done.wait [#allocation4], 128  }
 0xb6b   :  { %3966 = vsyncadd [#allocation4], 4294967168 }
 0xb6c   :  { %2921 = vsyncpa [#allocation3], 1 }
 0xb6d   :  { %2922 = vsyncpa [#allocation4], 1 }

</bundles_post_ra>
